<compile_context>
chip_gen: v7x
topology: tpu7x:2x2x1
jax: 0.10.0
libtpu: 0.0.40
codegen_flags: <defaults>
</compile_context>

<pallas_src>
import functools

import jax
import jax.numpy as jnp
from jax import lax
from jax.experimental import pallas as pl
from jax.experimental.pallas import tpu as pltpu

EPS = 1e-5


def _layernorm_f32(t, gamma, beta):
    t = t.astype(jnp.float32)
    mu = jnp.mean(t, axis=-1, keepdims=True)
    var = jnp.mean(jnp.square(t - mu), axis=-1, keepdims=True)
    return (t - mu) * lax.rsqrt(var + EPS) * gamma + beta


def prenorm_crossattn_kernel(x_ref, c_ref,
                             g_ref, b_ref, gc_ref, bc_ref,
                             wq_ref, wkv_ref, wo_ref,
                             o_ref,
                             k_sc, v_sc, *, mxu_dtype):
    qt = pl.program_id(1)
    d = k_sc.shape[-1]

    # --- Per-batch K/V cache: normed context + fused Wk|Wv projection, computed
    #     only on the first query tile of each batch row (q-tile axis is "arbitrary"
    #     so every batch row starts at qt == 0 on its core). ---------------------
    @pl.when(qt == 0)
    def _():
        cn = _layernorm_f32(c_ref[0], gc_ref[...], bc_ref[...])        # (Nc, Dc) f32
        kv = jnp.dot(cn.astype(mxu_dtype), wkv_ref[...],
                     preferred_element_type=jnp.float32)               # (Nc, 2D) f32
        k_sc[...] = kv[:, :d].astype(k_sc.dtype)
        v_sc[...] = kv[:, d:].astype(v_sc.dtype)

    # --- LayerNorm of this query tile (f32 elementwise on the VPU). -------------
    xn = _layernorm_f32(x_ref[0], g_ref[...], b_ref[...])              # (TQ, D) f32

    # q projection; the 1/sqrt(d) attention scale was folded into Wq in the wrapper.
    q = jnp.dot(xn.astype(mxu_dtype), wq_ref[...],
                preferred_element_type=jnp.float32)                    # (TQ, D) f32

    # Scores contract the last dims directly — no explicit k transpose / relayout.
    s = jnp.einsum("qd,kd->qk", q.astype(mxu_dtype), k_sc[...],
                   preferred_element_type=jnp.float32)                 # (TQ, Nc) f32
    s = s - jnp.max(s, axis=-1, keepdims=True)
    p = jnp.exp(s)
    row_sum = jnp.sum(p, axis=-1, keepdims=True)                       # (TQ, 1) f32

    # Deferred softmax normalization: scale the (TQ, D) attention output instead of
    # the (TQ, Nc) probabilities; reciprocal runs on the (otherwise idle) EUP slot.
    attn = jnp.dot(p.astype(mxu_dtype), v_sc[...],
                   preferred_element_type=jnp.float32)                 # (TQ, D) f32
    attn = attn * pl.reciprocal(row_sum, approx=True)

    fn_out = jnp.dot(attn.astype(mxu_dtype), wo_ref[...],
                     preferred_element_type=jnp.float32)               # (TQ, D) f32

    # --- PreNorm residual: fn(norm(x), context=norm(context)) + norm(x) ---------
    o_ref[0] = (fn_out + xn).astype(o_ref.dtype)


def prenorm_crossattn(x, context, params, *, mxu_dtype=jnp.bfloat16, tq=128):
    """Fused PreNorm + cross-attention. x: (B, Nx, D), context: (B, Nc, Dc).

    tq: query-tile rows per grid step. Multiple of 128 (MXU-friendly on all chips);
    size it so (tq x Nc f32 scores) + 2x(Nc x D K/V) + double-buffered x/out tiles
    stay well under the per-generation VMEM budget (64 MiB physical on v7x).
    """
    B, Nx, D = x.shape
    _, Nc, Dc = context.shape
    g, b, gc, bc, wq, wk, wv, wo = params

    tq = min(tq, Nx)
    assert Nx % tq == 0 and tq % 8 == 0, "query tile must divide Nx and be a multiple of 8"
    n_qt = Nx // tq

    # --- One-time parameter prep (outside the kernel): fold the attention scale
    #     into Wq, fuse Wk|Wv into a single 2D-wide RHS, store weights in the MXU
    #     compute dtype so the kernel does no per-step weight casts. -------------
    scale = 1.0 / jnp.sqrt(jnp.float32(D))
    wq_p = (wq * scale).astype(mxu_dtype)                     # (D, D)
    wkv_p = jnp.concatenate([wk, wv], axis=1).astype(mxu_dtype)  # (Dc, 2D)
    wo_p = wo.astype(mxu_dtype)                               # (D, D)

    kernel = functools.partial(prenorm_crossattn_kernel, mxu_dtype=mxu_dtype)

    def _const2(shape):
        return pl.BlockSpec(shape, lambda b_, q_: (0, 0))

    in_specs = [
        # x: one (1, TQ, D) tile per grid step -> auto double-buffered.
        pl.BlockSpec((1, tq, D), lambda b_, q_: (b_, q_, 0)),
        # context: whole (Nc, Dc) slab for the current batch; index map is constant
        # along the q-tile axis so it is DMA'd once per batch row.
        pl.BlockSpec((1, Nc, Dc), lambda b_, q_: (b_, 0, 0)),
        # LayerNorm affines + projection weights: constant index maps (fetched once).
        _const2((1, D)), _const2((1, D)), _const2((1, Dc)), _const2((1, Dc)),
        _const2((D, D)), _const2((Dc, 2 * D)), _const2((D, D)),
    ]
    out_specs = pl.BlockSpec((1, tq, D), lambda b_, q_: (b_, q_, 0))

    out = pl.pallas_call(
        kernel,
        grid=(B, n_qt),
        in_specs=in_specs,
        out_specs=out_specs,
        out_shape=jax.ShapeDtypeStruct((B, Nx, D), x.dtype),
        scratch_shapes=[
            pltpu.VMEM((Nc, D), mxu_dtype),   # cached K for current batch
            pltpu.VMEM((Nc, D), mxu_dtype),   # cached V for current batch
        ],
        compiler_params=pltpu.CompilerParams(
            # batch axis -> both v7x TensorCores; q-tile axis must stay sequential
            # so the @pl.when(qt == 0) K/V cache is valid.
            dimension_semantics=("parallel", "arbitrary"),
            vmem_limit_bytes=64 * 1024 * 1024,
        ),
    )(x, context, g, b, gc, bc, wq_p, wkv_p, wo_p)
    return out


def prenorm_crossattn_ref(x, context, params):
    """Pure-JAX reference (highest matmul precision) for correctness check."""
    g, b, gc, bc, wq, wk, wv, wo = params
    hp = lax.Precision.HIGHEST

    def ln(t, gamma, beta):
        mu = jnp.mean(t, axis=-1, keepdims=True)
        var = jnp.mean((t - mu) ** 2, axis=-1, keepdims=True)
        return (t - mu) * lax.rsqrt(var + EPS) * gamma + beta

    xn = ln(x, g[0], b[0])
    cn = ln(context, gc[0], bc[0])
    q = jnp.einsum("bnd,de->bne", xn, wq, precision=hp)
    k = jnp.einsum("bmc,ce->bme", cn, wk, precision=hp)
    v = jnp.einsum("bmc,ce->bme", cn, wv, precision=hp)
    s = jnp.einsum("bne,bme->bnm", q, k, precision=hp) / jnp.sqrt(jnp.float32(q.shape[-1]))
    p = jax.nn.softmax(s, axis=-1)
    o = jnp.einsum("bnm,bme->bne", p, v, precision=hp)
    return jnp.einsum("bne,ed->bnd", o, wo, precision=hp) + xn


if __name__ == "__main__":
    key = jax.random.PRNGKey(0)
    # Small shapes, but big enough to exercise the (batch, query-tile) grid:
    # grid = (2, 2) with TQ=128. D=128 keeps the output stores lane-dense (unmasked
    # vst). Dc != D exercises the context_dim LayerNorm path of PreNorm.
    B, Nx, Nc, D, Dc = 2, 256, 64, 128, 64

    keys = jax.random.split(key, 10)
    x = jax.random.normal(keys[0], (B, Nx, D), dtype=jnp.float32)
    context = jax.random.normal(keys[1], (B, Nc, Dc), dtype=jnp.float32)

    # Non-trivial gamma/beta to exercise the LayerNorm affine.
    g = 1.0 + 0.1 * jax.random.normal(keys[2], (1, D), dtype=jnp.float32)
    b = 0.1 * jax.random.normal(keys[3], (1, D), dtype=jnp.float32)
    gc = 1.0 + 0.1 * jax.random.normal(keys[4], (1, Dc), dtype=jnp.float32)
    bc = 0.1 * jax.random.normal(keys[5], (1, Dc), dtype=jnp.float32)
    wq = jax.random.normal(keys[6], (D, D), dtype=jnp.float32) / jnp.sqrt(D)
    wk = jax.random.normal(keys[7], (Dc, D), dtype=jnp.float32) / jnp.sqrt(Dc)
    wv = jax.random.normal(keys[8], (Dc, D), dtype=jnp.float32) / jnp.sqrt(Dc)
    wo = jax.random.normal(keys[9], (D, D), dtype=jnp.float32) / jnp.sqrt(D)
    params = (g, b, gc, bc, wq, wk, wv, wo)

    ref = prenorm_crossattn_ref(x, context, params)

    # f32-MXU path: exact apart from the approx softmax reciprocal.
    out_f32 = jax.block_until_ready(
        prenorm_crossattn(x, context, params, mxu_dtype=jnp.float32, tq=128))
    assert out_f32.shape == (B, Nx, D)
    assert jnp.allclose(out_f32, ref, rtol=5e-3, atol=5e-3), "f32 path mismatch vs JAX reference"

    # bf16-MXU path (fast path on all three generations): bf16 MXU inputs / weights,
    # f32 accumulation and elementwise math.
    out_bf16 = jax.block_until_ready(
        prenorm_crossattn(x, context, params, mxu_dtype=jnp.bfloat16, tq=128))
    assert out_bf16.shape == (B, Nx, D)
    assert jnp.allclose(out_bf16, ref, rtol=5e-2, atol=5e-2), "bf16 path mismatch vs JAX reference"

    print("KERNEL_OK")
</pallas_src>

<mosaic_0001>
module attributes {stable_mosaic.version = 11 : i64} {
  func.func @prenorm_crossattn_kernel(%arg0: i32, %arg1: i32, %arg2: memref<1x128x128xf32, #tpu.memory_space<vmem>>, %arg3: memref<1x64x64xf32, #tpu.memory_space<vmem>>, %arg4: memref<1x128xf32, #tpu.memory_space<vmem>>, %arg5: memref<1x128xf32, #tpu.memory_space<vmem>>, %arg6: memref<1x64xf32, #tpu.memory_space<vmem>>, %arg7: memref<1x64xf32, #tpu.memory_space<vmem>>, %arg8: memref<128x128xf32, #tpu.memory_space<vmem>>, %arg9: memref<64x256xf32, #tpu.memory_space<vmem>>, %arg10: memref<128x128xf32, #tpu.memory_space<vmem>>, %arg11: memref<1x128x128xf32, #tpu.memory_space<vmem>>, %arg12: memref<64x128xf32, #tpu.memory_space<vmem>>, %arg13: memref<64x128xf32, #tpu.memory_space<vmem>>) attributes {dimension_semantics = [#tpu.dimension_semantics<parallel>, #tpu.dimension_semantics<arbitrary>], iteration_bounds = array<i64: 2, 2>, scalar_prefetch = 0 : i64, scratch_operands = 2 : i64, tpu.core_type = #tpu.core_type<tc>, window_params = [{transform_indices = @transform_0, window_bounds = array<i64: 1, 128, 128>}, {transform_indices = @transform_1, window_bounds = array<i64: 1, 64, 64>}, {pipeline_mode = #tpu.pipeline_mode<synchronous>, transform_indices = @transform_2, window_bounds = array<i64: 1, 128>}, {pipeline_mode = #tpu.pipeline_mode<synchronous>, transform_indices = @transform_3, window_bounds = array<i64: 1, 128>}, {pipeline_mode = #tpu.pipeline_mode<synchronous>, transform_indices = @transform_4, window_bounds = array<i64: 1, 64>}, {pipeline_mode = #tpu.pipeline_mode<synchronous>, transform_indices = @transform_5, window_bounds = array<i64: 1, 64>}, {pipeline_mode = #tpu.pipeline_mode<synchronous>, transform_indices = @transform_6, window_bounds = array<i64: 128, 128>}, {pipeline_mode = #tpu.pipeline_mode<synchronous>, transform_indices = @transform_7, window_bounds = array<i64: 64, 256>}, {pipeline_mode = #tpu.pipeline_mode<synchronous>, transform_indices = @transform_8, window_bounds = array<i64: 128, 128>}, {transform_indices = @transform_9, window_bounds = array<i64: 1, 128, 128>}]} {
    %c0_i32 = arith.constant 0 : i32
    %0 = arith.cmpi eq, %arg1, %c0_i32 : i32
    %1 = arith.extui %0 : i1 to i32
    %c0_i32_0 = arith.constant 0 : i32
    %2 = arith.cmpi ne, %1, %c0_i32_0 : i32
    scf.if %2 {
      %c0_28 = arith.constant 0 : index
      %c0_29 = arith.constant 0 : index
      %c0_30 = arith.constant 0 : index
      %51 = vector.load %arg3[%c0_28, %c0_29, %c0_30] : memref<1x64x64xf32, #tpu.memory_space<vmem>>, vector<1x64x64xf32>
      %52 = vector.shape_cast %51 : vector<1x64x64xf32> to vector<64x64xf32>
      %c0_31 = arith.constant 0 : index
      %c0_32 = arith.constant 0 : index
      %53 = vector.load %arg6[%c0_31, %c0_32] : memref<1x64xf32, #tpu.memory_space<vmem>>, vector<1x64xf32>
      %c0_33 = arith.constant 0 : index
      %c0_34 = arith.constant 0 : index
      %54 = vector.load %arg7[%c0_33, %c0_34] : memref<1x64xf32, #tpu.memory_space<vmem>>, vector<1x64xf32>
      %cst_35 = arith.constant dense<0.000000e+00> : vector<64xf32>
      %55 = vector.multi_reduction <add>, %52, %cst_35 [1] : vector<64x64xf32> to vector<64xf32>
      %56 = vector.shape_cast %55 : vector<64xf32> to vector<64x1xf32>
      %cst_36 = arith.constant 6.400000e+01 : f32
      %57 = vector.broadcast %cst_36 : f32 to vector<64x1xf32>
      %58 = arith.divf %56, %57 : vector<64x1xf32>
      %59 = vector.broadcast %58 : vector<64x1xf32> to vector<64x64xf32>
      %60 = arith.subf %52, %59 : vector<64x64xf32>
      %61 = arith.mulf %60, %60 : vector<64x64xf32>
      %cst_37 = arith.constant dense<0.000000e+00> : vector<64xf32>
      %62 = vector.multi_reduction <add>, %61, %cst_37 [1] : vector<64x64xf32> to vector<64xf32>
      %63 = vector.shape_cast %62 : vector<64xf32> to vector<64x1xf32>
      %cst_38 = arith.constant 6.400000e+01 : f32
      %64 = vector.broadcast %cst_38 : f32 to vector<64x1xf32>
      %65 = arith.divf %63, %64 : vector<64x1xf32>
      %66 = vector.broadcast %58 : vector<64x1xf32> to vector<64x64xf32>
      %67 = arith.subf %52, %66 : vector<64x64xf32>
      %cst_39 = arith.constant 9.99999974E-6 : f32
      %68 = vector.broadcast %cst_39 : f32 to vector<64x1xf32>
      %69 = arith.addf %65, %68 : vector<64x1xf32>
      %70 = math.rsqrt %69 : vector<64x1xf32>
      %71 = vector.broadcast %70 : vector<64x1xf32> to vector<64x64xf32>
      %72 = arith.mulf %67, %71 : vector<64x64xf32>
      %73 = vector.broadcast %53 : vector<1x64xf32> to vector<64x64xf32>
      %74 = arith.mulf %72, %73 : vector<64x64xf32>
      %75 = vector.broadcast %54 : vector<1x64xf32> to vector<64x64xf32>
      %76 = arith.addf %74, %75 : vector<64x64xf32>
      %c0_40 = arith.constant 0 : index
      %c0_41 = arith.constant 0 : index
      %77 = vector.load %arg9[%c0_40, %c0_41] : memref<64x256xf32, #tpu.memory_space<vmem>>, vector<64x256xf32>
      %cst_42 = arith.constant dense<0.000000e+00> : vector<64x256xf32>
      %78 = tpu.matmul %76, %77, %cst_42 {dimension_numbers = #tpu.dot_dimension_numbers<[1], [0], [0], [1], [0, 0, 1, 1], [], []>} : vector<64x64xf32>, vector<64x256xf32>, vector<64x256xf32> -> vector<64x256xf32>
      %79 = vector.extract_strided_slice %78 {offsets = [0, 0], sizes = [64, 128], strides = [1, 1]} : vector<64x256xf32> to vector<64x128xf32>
      %c0_43 = arith.constant 0 : index
      %c0_44 = arith.constant 0 : index
      %80 = vector.load %arg12[%c0_43, %c0_44] : memref<64x128xf32, #tpu.memory_space<vmem>>, vector<64x128xf32>
      tpu.vector_store %arg12[%c0_43, %c0_44], %79 {strides = array<i32>} : memref<64x128xf32, #tpu.memory_space<vmem>>, vector<64x128xf32>,
      %81 = vector.extract_strided_slice %78 {offsets = [0, 128], sizes = [64, 128], strides = [1, 1]} : vector<64x256xf32> to vector<64x128xf32>
      %c0_45 = arith.constant 0 : index
      %c0_46 = arith.constant 0 : index
      %82 = vector.load %arg13[%c0_45, %c0_46] : memref<64x128xf32, #tpu.memory_space<vmem>>, vector<64x128xf32>
      tpu.vector_store %arg13[%c0_45, %c0_46], %81 {strides = array<i32>} : memref<64x128xf32, #tpu.memory_space<vmem>>, vector<64x128xf32>,
    } else {
    }
    %c0 = arith.constant 0 : index
    %c0_1 = arith.constant 0 : index
    %c0_2 = arith.constant 0 : index
    %3 = vector.load %arg2[%c0, %c0_1, %c0_2] : memref<1x128x128xf32, #tpu.memory_space<vmem>>, vector<1x128x128xf32>
    %4 = vector.shape_cast %3 : vector<1x128x128xf32> to vector<128x128xf32>
    %c0_3 = arith.constant 0 : index
    %c0_4 = arith.constant 0 : index
    %5 = vector.load %arg4[%c0_3, %c0_4] : memref<1x128xf32, #tpu.memory_space<vmem>>, vector<1x128xf32>
    %c0_5 = arith.constant 0 : index
    %c0_6 = arith.constant 0 : index
    %6 = vector.load %arg5[%c0_5, %c0_6] : memref<1x128xf32, #tpu.memory_space<vmem>>, vector<1x128xf32>
    %cst = arith.constant dense<0.000000e+00> : vector<128xf32>
    %7 = vector.multi_reduction <add>, %4, %cst [1] : vector<128x128xf32> to vector<128xf32>
    %8 = vector.shape_cast %7 : vector<128xf32> to vector<128x1xf32>
    %cst_7 = arith.constant 1.280000e+02 : f32
    %9 = vector.broadcast %cst_7 : f32 to vector<128x1xf32>
    %10 = arith.divf %8, %9 : vector<128x1xf32>
    %11 = vector.broadcast %10 : vector<128x1xf32> to vector<128x128xf32>
    %12 = arith.subf %4, %11 : vector<128x128xf32>
    %13 = arith.mulf %12, %12 : vector<128x128xf32>
    %cst_8 = arith.constant dense<0.000000e+00> : vector<128xf32>
    %14 = vector.multi_reduction <add>, %13, %cst_8 [1] : vector<128x128xf32> to vector<128xf32>
    %15 = vector.shape_cast %14 : vector<128xf32> to vector<128x1xf32>
    %cst_9 = arith.constant 1.280000e+02 : f32
    %16 = vector.broadcast %cst_9 : f32 to vector<128x1xf32>
    %17 = arith.divf %15, %16 : vector<128x1xf32>
    %18 = vector.broadcast %10 : vector<128x1xf32> to vector<128x128xf32>
    %19 = arith.subf %4, %18 : vector<128x128xf32>
    %cst_10 = arith.constant 9.99999974E-6 : f32
    %20 = vector.broadcast %cst_10 : f32 to vector<128x1xf32>
    %21 = arith.addf %17, %20 : vector<128x1xf32>
    %22 = math.rsqrt %21 : vector<128x1xf32>
    %23 = vector.broadcast %22 : vector<128x1xf32> to vector<128x128xf32>
    %24 = arith.mulf %19, %23 : vector<128x128xf32>
    %25 = vector.broadcast %5 : vector<1x128xf32> to vector<128x128xf32>
    %26 = arith.mulf %24, %25 : vector<128x128xf32>
    %27 = vector.broadcast %6 : vector<1x128xf32> to vector<128x128xf32>
    %28 = arith.addf %26, %27 : vector<128x128xf32>
    %c0_11 = arith.constant 0 : index
    %c0_12 = arith.constant 0 : index
    %29 = vector.load %arg8[%c0_11, %c0_12] : memref<128x128xf32, #tpu.memory_space<vmem>>, vector<128x128xf32>
    %cst_13 = arith.constant dense<0.000000e+00> : vector<128x128xf32>
    %30 = tpu.matmul %28, %29, %cst_13 {dimension_numbers = #tpu.dot_dimension_numbers<[1], [0], [0], [1], [0, 0, 1, 1], [], []>} : vector<128x128xf32>, vector<128x128xf32>, vector<128x128xf32> -> vector<128x128xf32>
    %c0_14 = arith.constant 0 : index
    %c0_15 = arith.constant 0 : index
    %31 = vector.load %arg12[%c0_14, %c0_15] : memref<64x128xf32, #tpu.memory_space<vmem>>, vector<64x128xf32>
    "tpu.trace_start"() <{level = 10 : i32, message = "qd,kd->qk"}> : () -> ()
    %cst_16 = arith.constant dense<0.000000e+00> : vector<128x64xf32>
    %32 = tpu.matmul %30, %31, %cst_16 {dimension_numbers = #tpu.dot_dimension_numbers<[1], [1], [0], [0], [0, 0, 1, 0], [], []>} : vector<128x128xf32>, vector<64x128xf32>, vector<128x64xf32> -> vector<128x64xf32>
    "tpu.trace_stop"() : () -> ()
    %cst_17 = arith.constant dense<0xFF800000> : vector<128xf32>
    %33 = vector.multi_reduction <maximumf>, %32, %cst_17 [1] : vector<128x64xf32> to vector<128xf32>
    %34 = vector.shape_cast %33 : vector<128xf32> to vector<128x1xf32>
    %35 = vector.broadcast %34 : vector<128x1xf32> to vector<128x64xf32>
    %36 = arith.subf %32, %35 : vector<128x64xf32>
    %37 = math.exp %36 : vector<128x64xf32>
    %cst_18 = arith.constant dense<0.000000e+00> : vector<128xf32>
    %38 = vector.multi_reduction <add>, %37, %cst_18 [1] : vector<128x64xf32> to vector<128xf32>
    %39 = vector.shape_cast %38 : vector<128xf32> to vector<128x1xf32>
    %c0_19 = arith.constant 0 : index
    %c0_20 = arith.constant 0 : index
    %40 = vector.load %arg13[%c0_19, %c0_20] : memref<64x128xf32, #tpu.memory_space<vmem>>, vector<64x128xf32>
    %cst_21 = arith.constant dense<0.000000e+00> : vector<128x128xf32>
    %41 = tpu.matmul %37, %40, %cst_21 {dimension_numbers = #tpu.dot_dimension_numbers<[1], [0], [0], [1], [0, 0, 1, 1], [], []>} : vector<128x64xf32>, vector<64x128xf32>, vector<128x128xf32> -> vector<128x128xf32>
    %42 = tpu.reciprocal %39 {approx = true} : vector<128x1xf32> -> vector<128x1xf32>
    %43 = vector.broadcast %42 : vector<128x1xf32> to vector<128x128xf32>
    %44 = arith.mulf %41, %43 : vector<128x128xf32>
    %c0_22 = arith.constant 0 : index
    %c0_23 = arith.constant 0 : index
    %45 = vector.load %arg10[%c0_22, %c0_23] : memref<128x128xf32, #tpu.memory_space<vmem>>, vector<128x128xf32>
    %cst_24 = arith.constant dense<0.000000e+00> : vector<128x128xf32>
    %46 = tpu.matmul %44, %45, %cst_24 {dimension_numbers = #tpu.dot_dimension_numbers<[1], [0], [0], [1], [0, 0, 1, 1], [], []>} : vector<128x128xf32>, vector<128x128xf32>, vector<128x128xf32> -> vector<128x128xf32>
    %47 = arith.addf %46, %28 : vector<128x128xf32>
    %c0_25 = arith.constant 0 : index
    %c0_26 = arith.constant 0 : index
    %c0_27 = arith.constant 0 : index
    %48 = vector.load %arg11[%c0_25, %c0_26, %c0_27] : memref<1x128x128xf32, #tpu.memory_space<vmem>>, vector<1x128x128xf32>
    %49 = vector.shape_cast %48 : vector<1x128x128xf32> to vector<128x128xf32>
    %50 = vector.shape_cast %47 : vector<128x128xf32> to vector<1x128x128xf32>
    tpu.vector_store %arg11[%c0_25, %c0_26, %c0_27], %50 {strides = array<i32>} : memref<1x128x128xf32, #tpu.memory_space<vmem>>, vector<1x128x128xf32>,
    return
  }
  func.func @transform_0(%arg0: i32, %arg1: i32) -> (i32, i32, i32) {
    %c0_i32 = arith.constant 0 : i32
    %c0_i32_0 = arith.constant 0 : i32
    return %arg0, %arg1, %c0_i32 : i32, i32, i32
  }
  func.func @transform_1(%arg0: i32, %arg1: i32) -> (i32, i32, i32) {
    %c0_i32 = arith.constant 0 : i32
    %c0_i32_0 = arith.constant 0 : i32
    %c0_i32_1 = arith.constant 0 : i32
    return %arg0, %c0_i32, %c0_i32_0 : i32, i32, i32
  }
  func.func @transform_2(%arg0: i32, %arg1: i32) -> (i32, i32) {
    %c0_i32 = arith.constant 0 : i32
    %c0_i32_0 = arith.constant 0 : i32
    %c0_i32_1 = arith.constant 0 : i32
    return %c0_i32, %c0_i32_0 : i32, i32
  }
  func.func @transform_3(%arg0: i32, %arg1: i32) -> (i32, i32) {
    %c0_i32 = arith.constant 0 : i32
    %c0_i32_0 = arith.constant 0 : i32
    %c0_i32_1 = arith.constant 0 : i32
    return %c0_i32, %c0_i32_0 : i32, i32
  }
  func.func @transform_4(%arg0: i32, %arg1: i32) -> (i32, i32) {
    %c0_i32 = arith.constant 0 : i32
    %c0_i32_0 = arith.constant 0 : i32
    %c0_i32_1 = arith.constant 0 : i32
    return %c0_i32, %c0_i32_0 : i32, i32
  }
  func.func @transform_5(%arg0: i32, %arg1: i32) -> (i32, i32) {
    %c0_i32 = arith.constant 0 : i32
    %c0_i32_0 = arith.constant 0 : i32
    %c0_i32_1 = arith.constant 0 : i32
    return %c0_i32, %c0_i32_0 : i32, i32
  }
  func.func @transform_6(%arg0: i32, %arg1: i32) -> (i32, i32) {
    %c0_i32 = arith.constant 0 : i32
    %c0_i32_0 = arith.constant 0 : i32
    %c0_i32_1 = arith.constant 0 : i32
    return %c0_i32, %c0_i32_0 : i32, i32
  }
  func.func @transform_7(%arg0: i32, %arg1: i32) -> (i32, i32) {
    %c0_i32 = arith.constant 0 : i32
    %c0_i32_0 = arith.constant 0 : i32
    %c0_i32_1 = arith.constant 0 : i32
    return %c0_i32, %c0_i32_0 : i32, i32
  }
  func.func @transform_8(%arg0: i32, %arg1: i32) -> (i32, i32) {
    %c0_i32 = arith.constant 0 : i32
    %c0_i32_0 = arith.constant 0 : i32
    %c0_i32_1 = arith.constant 0 : i32
    return %c0_i32, %c0_i32_0 : i32, i32
  }
  func.func @transform_9(%arg0: i32, %arg1: i32) -> (i32, i32, i32) {
    %c0_i32 = arith.constant 0 : i32
    %c0_i32_0 = arith.constant 0 : i32
    return %arg0, %arg1, %c0_i32 : i32, i32, i32
  }
}

</mosaic_0001>

<bundles_post_ra>
// kernel: tpu_custom_call.1
= control target key start
LH: loop header
LB: loop body
LE: loop exit
PB: predicated region body
PF: predicated region fallthrough
CT: control target
= control target key end

     0   :  { %s4311_s0 = inlined_call_operand.hbm [shape: f32[2,256,128], index: 0, kind: input, shape index: {}]   ;;  %s4312_s1 = inlined_call_operand.hbm [shape: f32[2,64,64], index: 1, kind: input, shape index: {}]   ;;  %s4313_s2 = inlined_call_operand.hbm [shape: f32[1,128], index: 2, kind: input, shape index: {}]   ;;  %s4314_s3 = inlined_call_operand.hbm [shape: f32[1,128], index: 3, kind: input, shape index: {}]   ;;  %s4315_s4 = inlined_call_operand.hbm [shape: f32[1,64], index: 4, kind: input, shape index: {}]   ;;  %s4316_s5 = inlined_call_operand.hbm [shape: f32[1,64], index: 5, kind: input, shape index: {}]   ;;  %s4317_s6 = inlined_call_operand.hbm [shape: f32[128,128], index: 6, kind: input, shape index: {}]   ;;  %s4318_s7 = inlined_call_operand.hbm [shape: f32[64,256], index: 7, kind: input, shape index: {}]   ;;  %s4319_s8 = inlined_call_operand.hbm [shape: f32[128,128], index: 8, kind: input, shape index: {}]   ;;  %s4320_s9 = inlined_call_operand.hbm [shape: f32[2,256,128], index: 9, kind: output, shape index: {}]  }
   0x1   :  { %4335 = sst [smem:[#allocation32_spill]] %s4312_s1 }
   0x2   :  { %4336 = sst [smem:[#allocation33_spill]] %s4313_s2 }
   0x3   :  { %4337 = sst [smem:[#allocation34_spill]] %s4314_s3 }
   0x4   :  { %4338 = sst [smem:[#allocation35_spill]] %s4315_s4 }
   0x5   :  { %4339 = sst [smem:[#allocation36_spill]] %s4316_s5 }
   0x6   :  { %4340 = sst [smem:[#allocation37_spill]] %s4317_s6 }
   0x7   :  { %4341 = sst [smem:[#allocation38_spill]] %s4318_s7 }
   0x8   :  { %4342 = sst [smem:[#allocation39_spill]] %s4319_s8 }
   0x9   :  { %4343 = sst [smem:[#allocation40_spill]] %s4320_s9 }
   0xa   :  { %14 = vsyncpa [#allocation5], 0 }
   0xb   :  { %16 = vsyncpa [#allocation5 + $0x1], 0 }
   0xc   :  { %17 = vsyncpa [#allocation8], 0 }
   0xd   :  { %19 = vsyncpa [#allocation8 + $0x1], 0 }
   0xe   :  { %20 = vsyncpa [#allocation11], 0 }
   0xf   :  { %21 = vsyncpa [#allocation14], 0 }
  0x10   :  { %22 = vsyncpa [#allocation17], 0 }
  0x11   :  { %23 = vsyncpa [#allocation6], 0 }
  0x12   :  { %25 = vsyncpa [#allocation6 + $0x1], 0  ;;  %s3377_s30 = smov 0   ;;  %s3379_s10 = smov 0  }
  0x13   :  { %s3381_s11 = smov 0   ;;  %s3383_s12 = smov 0  }
  0x14   :  { %s3385_s13 = smov 0   ;;  %s3387_s14 = smov 0  }
  0x15   :  { %s3389_s15 = smov 0   ;;  %s3391_s16 = smov 0  }
  0x16   :  { %s3393_s17 = smov 0   ;;  %s3395_s18 = smov 0  }
  0x17   :  { %s3397_s19 = smov 0  }
  0x18 LB: > { %4344 = sst [smem:[#allocation27_spill]] %s3268_s30  ;;  %s3433_s20 = sadd.s32 4294967295, %s3308_s19   ;;  %s3308_s19 = sphi %s3397_s19, %s31_s19   ;;  %s3304_s18 = sphi %s3395_s18, %s4402_s18   ;;  %s3300_s17 = sphi %s3393_s17, %s4401_s17   ;;  %s3296_s16 = sphi %s3391_s16, %s4400_s16   ;;  %s3292_s15 = sphi %s3389_s15, %s4399_s15   ;;  %s3288_s14 = sphi %s3387_s14, %s4398_s14   ;;  %s3284_s13 = sphi %s3385_s13, %s4397_s13   ;;  %s3280_s12 = sphi %s3383_s12, %s4396_s12   ;;  %s3276_s11 = sphi %s3381_s11, %s4395_s11   ;;  %s3272_s10 = sphi %s3379_s10, %s4394_s10   ;;  %s3268_s30 = sphi %s3377_s30, %s4393_s30  }
  0x19   : > { %4345 = sst [smem:[#allocation28_spill]] %s3292_s15  ;;  %p2126_p0 = scmp.ge.s32.totalorder %s3308_s19, 1 }
  0x1a   : > { %4346 = sst [smem:[#allocation29_spill]] %s3296_s16  ;;  %p4323_p1 = scmp.eq.s32.totalorder %s3433_s20, 0 }
  0x1b   : > { %p277_p2 = scmp.lt.s32.totalorder %s3308_s19, 5  ;;  %s3310_s22 = smov [#allocation9]  }
  0x1c   : > { %s290_s23 = sshll.u32 %s3310_s22, 4  ;;  %s3311_s24 = smov [#allocation10]   ;;  %s291_s23 = int_to_ptr.vmem [resolvable:$true] %s290_s23 }
  0x1d   : > { %p3438_p3 = pnand %p2126_p0, %p277_p2  ;;  %s301_s25 = sshll.u32 %s3311_s24, 4  ;;  %s3450_s25 = int_to_ptr.vmem [resolvable:$true] %s301_s25 }
  0x1e   : > { %s3312_s27 = smov [#allocation13]   ;;  %s4350_s2 = sld [smem:[#allocation33_spill]] }
  0x1f   : > { %s4347_s21 = scalar_select %p3438_p3, 1, 0 }
  0x20   : > { %p2647_p4 = pneg %p3438_p3  ;;  %s323_s28 = sshll.u32 %s3312_s27, 4  ;;  %s3452_s28 = int_to_ptr.vmem [resolvable:$true] %s323_s28 }
  0x21   : > { %4348 = sst [smem:[#allocation30_spill]] %s4347_s21 }
  0x22   : > { %p3446_p5 = pnand %p2647_p4, %p4323_p1 }
  0x24   : > { %s2910_s22 = scalar_lea.hbm %s4350_s2, 16  ;;  %p3462_p7 = pneg %p3446_p5 }
  0x25   : > { %p2911_p6 = scmp.ne.s32.totalorder %s4350_s2, %s2910_s22  ;;  %p2917_p10 = scmp.lt.u32.totalorder %s2910_s22, %s4350_s2 }
  0x27   : > { %p2913_p8 = pnand %p3462_p7, %p2911_p6 }
  0x29   : > { %p2914_p9 = pneg %p2913_p8 }
  0x2b   : > { %p2919_p11 = pnand %p2917_p10, %p2914_p9 }
  0x2d   : > { %2922 = shalt.err (!%p2919_p11)
}
  0x2e   : > { %s2923_s9 = scalar_lea.vmem %s291_s23, 16  ;;  %s2930_s15 = scalar_lea.vmem %s291_s23, 32 }
  0x2f   : > { %p2924_p12 = scmp.ne.s32.totalorder %s291_s23, %s2923_s9  ;;  %p2931_p2 = scmp.lt.s32.totalorder %s291_s23, %s291_s23 }
  0x30   : > { %p2932_p4 = scmp.lt.s32.totalorder %s2930_s15, %s2923_s9 }
  0x31   : > { %p2926_p13 = pnand %p2924_p12, %p3462_p7 }
  0x32   : > { %p2933_p1 = por %p2932_p4, %p2931_p2 }
  0x33   : > { %p2927_p0 = pneg %p2926_p13 }
  0x35   : > { %p2934_p3 = pnand %p2933_p1, %p2927_p0 }
  0x37   : > { %2937 = shalt.err (!%p2934_p3)
}
  0x38   : > { %2650 = dma.hbm_to_vmem [thread:$0]  (!%p3446_p5), %s4350_s2, 16, %s291_s23, [#allocation8]  }
  0x39   : > { %s4352_s3 = sld [smem:[#allocation34_spill]] }
  0x3f   : > { %s2938_s27 = scalar_lea.hbm %s4352_s3, 16 }
  0x40   : > { %p2939_p6 = scmp.ne.s32.totalorder %s4352_s3, %s2938_s27  ;;  %p2945_p1 = scmp.lt.u32.totalorder %s2938_s27, %s4352_s3 }
  0x42   : > { %p2941_p8 = pnand %p2939_p6, %p3462_p7 }
  0x44   : > { %p2942_p9 = pneg %p2941_p8 }
  0x46   : > { %p2947_p3 = pnand %p2945_p1, %p2942_p9 }
  0x48   : > { %2950 = shalt.err (!%p2947_p3)
}
  0x49   : > { %s2951_s23 = scalar_lea.vmem %s3450_s25, 16  ;;  %s2958_s1 = scalar_lea.vmem %s3450_s25, 32 }
  0x4a   : > { %p2952_p10 = scmp.ne.s32.totalorder %s3450_s25, %s2951_s23  ;;  %p2959_p13 = scmp.lt.s32.totalorder %s3450_s25, %s3450_s25 }
  0x4b   : > { %p2960_p0 = scmp.lt.s32.totalorder %s2958_s1, %s2951_s23 }
  0x4c   : > { %p2954_p11 = pnand %p2952_p10, %p3462_p7 }
  0x4d   : > { %p2961_p2 = por %p2960_p0, %p2959_p13 }
  0x4e   : > { %p2955_p12 = pneg %p2954_p11 }
  0x50   : > { %p2962_p4 = pnand %p2961_p2, %p2955_p12 }
  0x52   : > { %2965 = shalt.err (!%p2962_p4)
}
  0x53   : > { %2653 = dma.hbm_to_vmem [thread:$0]  (!%p3446_p5), %s4352_s3, 16, %s3450_s25, [#allocation11]  }
  0x54   : > { %s4353_s5 = sld [smem:[#allocation36_spill]] }
  0x5a   : > { %s2966_s22 = scalar_lea.hbm %s4353_s5, 16 }
  0x5b   : > { %p2967_p6 = scmp.ne.s32.totalorder %s4353_s5, %s2966_s22  ;;  %p2973_p1 = scmp.lt.u32.totalorder %s2966_s22, %s4353_s5 }
  0x5d   : > { %p2969_p8 = pnand %p2967_p6, %p3462_p7 }
  0x5f   : > { %p2970_p9 = pneg %p2969_p8 }
  0x61   : > { %p2975_p3 = pnand %p2973_p1, %p2970_p9 }
  0x63   : > { %2978 = shalt.err (!%p2975_p3)
}
  0x64   : > { %s2979_s25 = scalar_lea.vmem %s3452_s28, 16  ;;  %s2986_s1 = scalar_lea.vmem %s3452_s28, 32 }
  0x65   : > { %p2980_p10 = scmp.ne.s32.totalorder %s3452_s28, %s2979_s25  ;;  %p2987_p13 = scmp.lt.s32.totalorder %s3452_s28, %s3452_s28 }
  0x66   : > { %p2988_p0 = scmp.lt.s32.totalorder %s2986_s1, %s2979_s25 }
  0x67   : > { %p2982_p11 = pnand %p2980_p10, %p3462_p7 }
  0x68   : > { %p2989_p2 = por %p2988_p0, %p2987_p13 }
  0x69   : > { %p2983_p12 = pneg %p2982_p11 }
  0x6b   : > { %p2990_p4 = pnand %p2989_p2, %p2983_p12 }
  0x6d   : > { %2993 = shalt.err (!%p2990_p4)
}
  0x6e   : > { %2659 = dma.hbm_to_vmem [thread:$0]  (!%p3446_p5), %s4353_s5, 16, %s3452_s28, [#allocation14]  }
  0x6f   : > { %s3313_s29 = smov [#allocation16]   ;;  %s4354_s7 = sld [smem:[#allocation38_spill]] }
  0x70   : > { %s346_s21 = sshll.u32 %s3313_s29, 4  ;;  %s347_s21 = int_to_ptr.vmem [resolvable:$true] %s346_s21 }
  0x75   : > { %s2994_s9 = scalar_lea.hbm %s4354_s7, 2048 }
  0x76   : > { %p2995_p6 = scmp.ne.s32.totalorder %s4354_s7, %s2994_s9  ;;  %p3001_p1 = scmp.lt.u32.totalorder %s2994_s9, %s4354_s7 }
  0x78   : > { %p2997_p8 = pnand %p2995_p6, %p3462_p7 }
  0x7a   : > { %p2998_p9 = pneg %p2997_p8 }
  0x7c   : > { %p3003_p3 = pnand %p3001_p1, %p2998_p9 }
  0x7e   : > { %3006 = shalt.err (!%p3003_p3)
}
  0x7f   : > { %s3007_s28 = scalar_lea.vmem %s347_s21, 2048  ;;  %p3015_p13 = scmp.lt.s32.totalorder %s347_s21, %s347_s21 }
  0x80   : > { %p3008_p10 = scmp.ne.s32.totalorder %s347_s21, %s3007_s28  ;;  %p3016_p0 = scmp.lt.s32.totalorder %s3007_s28, %s3007_s28 }
  0x82   : > { %p3010_p11 = pnand %p3008_p10, %p3462_p7  ;;  %p3017_p2 = por %p3016_p0, %p3015_p13 }
  0x84   : > { %p3011_p12 = pneg %p3010_p11 }
  0x86   : > { %p3018_p4 = pnand %p3017_p2, %p3011_p12 }
  0x88   : > { %3021 = shalt.err (!%p3018_p4)
}
  0x89   : > { %s3314_s30 = smov 256   ;;  %s3315_s16 = smov 16  }
  0x8a   : > { %2665 = dma.hbm_to_vmem [thread:$0]  (!%p3446_p5), %s4354_s7, 2048, %s347_s21, [#allocation17], %s3314_s30, %s3314_s30, %s3315_s16  }
  0x8b   : > { %s3316_s27 = smov [#allocation12]   ;;  %s3317_s15 = smov [#allocation15]  }
  0x8c   : > { %s312_s9 = sshll.u32 %s3316_s27, 4  ;;  %s333_s23 = sshll.u32 %s3317_s15, 4  ;;  %s313_s9 = int_to_ptr.vmem [resolvable:$true] %s312_s9  ;;  %s3544_s23 = int_to_ptr.vmem [resolvable:$true] %s333_s23 }
  0x8d   : > { %s4355_s4 = sld [smem:[#allocation35_spill]] }
  0x93   : > { %s3022_s28 = scalar_lea.hbm %s4355_s4, 16 }
  0x94   : > { %p3023_p6 = scmp.ne.s32.totalorder %s4355_s4, %s3022_s28  ;;  %p3029_p1 = scmp.lt.u32.totalorder %s3022_s28, %s4355_s4 }
  0x96   : > { %p3025_p8 = pnand %p3023_p6, %p3462_p7 }
  0x98   : > { %p3026_p9 = pneg %p3025_p8 }
  0x9a   : > { %p3031_p3 = pnand %p3029_p1, %p3026_p9 }
  0x9c   : > { %3034 = shalt.err (!%p3031_p3)
}
  0x9d   : > { %s3035_s30 = scalar_lea.vmem %s313_s9, 16  ;;  %s3042_s16 = scalar_lea.vmem %s313_s9, 32 }
  0x9e   : > { %p3036_p10 = scmp.ne.s32.totalorder %s313_s9, %s3035_s30  ;;  %p3043_p13 = scmp.lt.s32.totalorder %s313_s9, %s313_s9 }
  0x9f   : > { %p3044_p0 = scmp.lt.s32.totalorder %s3042_s16, %s3035_s30 }
  0xa0   : > { %p3038_p11 = pnand %p3036_p10, %p3462_p7 }
  0xa1   : > { %p3045_p2 = por %p3044_p0, %p3043_p13 }
  0xa2   : > { %p3039_p12 = pneg %p3038_p11 }
  0xa4   : > { %p3046_p4 = pnand %p3045_p2, %p3039_p12 }
  0xa6   : > { %3049 = shalt.err (!%p3046_p4)
}
  0xa7   : > { %2656 = dma.hbm_to_vmem [thread:$0]  (!%p3446_p5), %s4355_s4, 16, %s313_s9, [#allocation11]  }
  0xa8   : > { %s4356_s6 = sld [smem:[#allocation37_spill]] }
  0xae   : > { %s3050_s15 = scalar_lea.hbm %s4356_s6, 2048 }
  0xaf   : > { %p3051_p6 = scmp.ne.s32.totalorder %s4356_s6, %s3050_s15  ;;  %p3057_p1 = scmp.lt.u32.totalorder %s3050_s15, %s4356_s6 }
  0xb1   : > { %p3053_p8 = pnand %p3051_p6, %p3462_p7 }
  0xb3   : > { %p3054_p9 = pneg %p3053_p8 }
  0xb5   : > { %p3059_p3 = pnand %p3057_p1, %p3054_p9 }
  0xb7   : > { %3062 = shalt.err (!%p3059_p3)
}
  0xb8   : > { %s3063_s9 = scalar_lea.vmem %s3544_s23, 2048  ;;  %p3071_p13 = scmp.lt.s32.totalorder %s3544_s23, %s3544_s23 }
  0xb9   : > { %p3064_p10 = scmp.ne.s32.totalorder %s3544_s23, %s3063_s9  ;;  %p3072_p0 = scmp.lt.s32.totalorder %s3063_s9, %s3063_s9 }
  0xbb   : > { %p3066_p11 = pnand %p3064_p10, %p3462_p7  ;;  %p3073_p2 = por %p3072_p0, %p3071_p13 }
  0xbd   : > { %p3067_p12 = pneg %p3066_p11 }
  0xbf   : > { %p3074_p4 = pnand %p3073_p2, %p3067_p12 }
  0xc1   : > { %3077 = shalt.err (!%p3074_p4)
}
  0xc2   : > { %s4326_s21 = smov 128   ;;  %s4328_s30 = smov 8  }
  0xc3   : > { %2662 = dma.hbm_to_vmem [thread:$0]  (!%p3446_p5), %s4356_s6, 2048, %s3544_s23, [#allocation14], %s4326_s21, %s4326_s21, %s4328_s30  }
  0xc4   : > { %s3320_s3 = smov [#allocation18]   ;;  %s4357_s8 = sld [smem:[#allocation39_spill]] }
  0xc5   : > { %s359_s22 = sshll.u32 %s3320_s3, 4  ;;  %s360_s22 = int_to_ptr.vmem [resolvable:$true] %s359_s22 }
  0xca   : > { %s3078_s25 = scalar_lea.hbm %s4357_s8, 2048 }
  0xcb   : > { %p3079_p6 = scmp.ne.s32.totalorder %s4357_s8, %s3078_s25  ;;  %p3085_p1 = scmp.lt.u32.totalorder %s3078_s25, %s4357_s8 }
  0xcd   : > { %p3081_p8 = pnand %p3079_p6, %p3462_p7 }
  0xcf   : > { %p3082_p9 = pneg %p3081_p8 }
  0xd1   : > { %p3087_p3 = pnand %p3085_p1, %p3082_p9 }
  0xd3   : > { %3090 = shalt.err (!%p3087_p3)
}
  0xd4   : > { %s3091_s23 = scalar_lea.vmem %s360_s22, 2048  ;;  %p3099_p13 = scmp.lt.s32.totalorder %s360_s22, %s360_s22 }
  0xd5   : > { %p3092_p10 = scmp.ne.s32.totalorder %s360_s22, %s3091_s23  ;;  %p3100_p0 = scmp.lt.s32.totalorder %s3091_s23, %s3091_s23 }
  0xd7   : > { %p3094_p11 = pnand %p3092_p10, %p3462_p7  ;;  %p3101_p2 = por %p3100_p0, %p3099_p13 }
  0xd9   : > { %p3095_p12 = pneg %p3094_p11 }
  0xdb   : > { %p3102_p4 = pnand %p3101_p2, %p3095_p12 }
  0xdd   : > { %3105 = shalt.err (!%p3102_p4)
}
  0xde   : > { %2668 = dma.hbm_to_vmem [thread:$0]  (!%p3446_p5), %s4357_s8, 2048, %s360_s22, [#allocation17], %s4326_s21, %s4326_s21, %s4328_s30  }
  0xdf   : > { %s2125_s26 = sadd.s32 4294967294, %s3308_s19   ;;  %s40_s24 = sadd.s32 1, %s3300_s17 }
  0xe0   : > { %s43_s3 = sadd.s32 1, %s3304_s18  ;;  %p41_p7 = scmp.ge.s32.totalorder %s40_s24, 2 }
  0xe1   : > { %s52_s27 = sadd.s32 1, %s3288_s14  ;;  %p59_p6 = scmp.ne.s32.totalorder %s3288_s14, %s3284_s13 }
  0xe2   : > { %p4332_p8 = scmp.eq.s32.totalorder %s3308_s19, 0  ;;  %s4404_s24 = smov (%p41_p7, %s40_s24), 0 }
  0xe3   : > { %s4406_s3 = smov (!%p41_p7, %s43_s3), %s3304_s18  ;;  %s48_s15 = ssub.s32 %s3300_s17, %s4404_s24 }
  0xe4   : > { %p3625_p9 = por %p4332_p8, %p59_p6  ;;  %p45_p5 = scmp.ge.s32.totalorder %s4406_s3, 2 }
  0xe5   : > { %p65_p1 = scmp.ne.s32.totalorder %s3284_s13, %s3280_s12  ;;  %p264_p3 = scmp.eq.s32.totalorder %s3433_s20, 3 }
  0xe6   : > { %p270_p10 = scmp.eq.s32.totalorder %s2125_s26, 3  ;;  %s4408_s3 = smov (%p45_p5, %s4406_s3), 0 }
  0xe7   : > { %4359 = sst [smem:[#allocation31_spill]] %s4408_s3  ;;  %p4360_p11 = scmp.eq.s32.totalorder %s3433_s20, 0 }
  0xe8   : > { %p3640_p13 = por %p264_p3, %p59_p6  ;;  %s3646_s28 = ssub.s32 %s3304_s18, %s4408_s3 }
  0xe9   : > { %p3636_p12 = por %p4360_p11, %p65_p1  ;;  %p3648_p0 = por %p270_p10, %p65_p1 }
  0xea   : > { %s4362_s1 = scalar_select %p3640_p13, 1, 0 }
  0xeb   : > { %s4363_s29 = scalar_select %p3648_p0, 1, 0 }
  0xec   : > { %s49_s9 = sor.u32 %s48_s15, %s3646_s28  ;;  %p4331_p7 = scmp.lt.s32.totalorder %s3308_s19, 4 }
  0xed   : > { %p50_p4 = scmp.eq.s32.totalorder %s49_s9, 0  ;;  %s373_s23 = sand.u32 1, %s3288_s14  }
  0xee   : > { %s2136_s16 = sshll.u32 %s3300_s17, 4  ;;  %s2135_s26 = sshll.u32 %s373_s23, 7 }
  0xef   : > { %s3658_s2 = scalar_select %p50_p4, %s3288_s14, %s52_s27  }
  0xf0   : > { %s2137_s21 = sshll.u32 %s3304_s18, 5  ;;  %s377_s4 = scalar_lea.vmem [#allocation4], %s2135_s26 }
  0xf1   : > { %s383_s30 = sadd.s32 %s2137_s21, %s2136_s16  ;;  %s386_s5 = sshll.u32 %s377_s4, 4  ;;  %s3661_s5 = int_to_ptr.vmem [resolvable:$true] %s386_s5 }
  0xf2   : > { %s2138_s6 = sshll.u32 %s383_s30, 7  ;;  %p3672_p6 = pnand %p4331_p7, %p3625_p9 }
  0xf3   : > { %s3666_s3 = scalar_lea.hbm %s4311_s0, %s2138_s6  ;;  %s3676_s4 = scalar_lea.sflag [#allocation5], %s373_s23 }
  0xf4   : > { %s3106_s21 = scalar_lea.hbm %s3666_s3, 2048  ;;  %p3108_p1 = pneg %p3672_p6 }
  0xf5   : > { %p3107_p5 = scmp.ne.s32.totalorder %s3666_s3, %s3106_s21  ;;  %s3111_s8 = scalar_lea.hbm %s4311_s0, 8192 }
  0xf6   : > { %p3112_p9 = scmp.lt.u32.totalorder %s3666_s3, %s4311_s0  ;;  %p3113_p11 = scmp.lt.u32.totalorder %s3111_s8, %s3106_s21 }
  0xf7   : > { %p3109_p3 = pnand %p3108_p1, %p3107_p5  ;;  %p3115_p7 = scmp.lt.u32.totalorder %s3106_s21, %s3666_s3 }
  0xf8   : > { %p3114_p4 = por %p3113_p11, %p3112_p9 }
  0xf9   : > { %p3110_p10 = pneg %p3109_p3 }
  0xfa   : > { %p3116_p8 = por %p3115_p7, %p3114_p4 }
  0xfc   : > { %p3117_p2 = pnand %p3116_p8, %p3110_p10 }
  0xfe   : > { %3120 = shalt.err (!%p3117_p2)
}
  0xff   : > { %s3121_s22 = scalar_lea.vmem %s3661_s5, 2048  ;;  %s3321_s9 = smov [#allocation4]  }
 0x100   : > { %p3122_p5 = scmp.ne.s32.totalorder %s3661_s5, %s3121_s22  ;;  %s3126_s23 = sshll.u32 %s3321_s9, 4  ;;  %s3127_s23 = int_to_ptr.vmem [resolvable:$false] %s3126_s23 }
 0x101   : > { %s3128_s16 = scalar_lea.vmem %s3127_s23, 4096  ;;  %p3129_p13 = scmp.lt.s32.totalorder %s3661_s5, %s3127_s23 }
 0x102   : > { %p3124_p3 = pnand %p3122_p5, %p3108_p1  ;;  %p3130_p9 = scmp.lt.s32.totalorder %s3128_s16, %s3121_s22 }
 0x104   : > { %p3125_p0 = pneg %p3124_p3  ;;  %p3131_p11 = por %p3130_p9, %p3129_p13 }
 0x106   : > { %p3132_p7 = pnand %p3131_p11, %p3125_p0 }
 0x108   : > { %3135 = shalt.err (!%p3132_p7)
}
 0x109   : > { %s4365_s26 = smov 8   ;;  %s4366_s21 = smov 128  }
 0x10a   : > { %s4367_s6 = sld [smem:[#allocation27_spill]]  ;;  %s78_s27 = sadd.s32 1, %s3276_s11 }
 0x10b   : > { %2672 = dma.hbm_to_vmem [thread:$0]  (!%p3672_p6), %s3666_s3, 2048, %s3661_s5, %s3676_s4, %s4366_s21, %s4366_s21, %s4365_s26  }
 0x10c   : > { %p4368_p8 = scmp.eq.s32.totalorder %s3646_s28, 0  ;;  %p85_p13 = scmp.ne.s32.totalorder %s3276_s11, %s3272_s10 }
 0x10d   : > { %s396_s8 = sand.u32 1, %s3308_s19   ;;  %s398_s30 = sand.u32 1, %s3276_s11  }
 0x10e   : > { %s3711_s7 = scalar_select %p4368_p8, %s3276_s11, %s78_s27  }
 0x10f   : > { %p4369_p2 = scmp.eq.s32.totalorder %s3308_s19, 0  ;;  %p4370_p10 = scmp.eq.s32.totalorder %s3433_s20, 0 }
 0x110   : > { %p91_p0 = scmp.ne.s32.totalorder %s3272_s10, %s4367_s6  ;;  %s2139_s22 = sshll.u32 %s398_s30, 6 }
 0x111   : > { %p87_p1 = por %p85_p13, %p4369_p2  ;;  %s2188_s9 = sshll.u32 %s3304_s18, 10 }
 0x112   : > { %p3723_p4 = por %p91_p0, %p4370_p10  ;;  %s4372_s5 = sld [smem:[#allocation32_spill]] }
 0x113   : > { %s400_s28 = scalar_lea.vmem [#allocation7], %s2139_s22  ;;  %p4373_p6 = scmp.lt.s32.totalorder %s3308_s19, 4 }
 0x114   : > { %s4371_s15 = scalar_select %p3723_p4, 1, 0 }
 0x115   : > { %s407_s4 = sshll.u32 %s400_s28, 4  ;;  %p3737_p5 = pnand %p4373_p6, %p87_p1  ;;  %s3733_s4 = int_to_ptr.vmem [resolvable:$true] %s407_s4 }
 0x116   : > { %s3741_s27 = scalar_lea.sflag [#allocation8], %s396_s8 }
 0x117   : > { %p3138_p9 = pneg %p3737_p5 }
 0x118   : > { %s3731_s3 = scalar_lea.hbm %s4372_s5, %s2188_s9  ;;  %s3141_s23 = scalar_lea.hbm %s4372_s5, 2048 }
 0x119   : > { %s3136_s30 = scalar_lea.hbm %s3731_s3, 1024  ;;  %p3142_p8 = scmp.lt.u32.totalorder %s3731_s3, %s4372_s5 }
 0x11a   : > { %p3137_p3 = scmp.ne.s32.totalorder %s3731_s3, %s3136_s30  ;;  %p3143_p13 = scmp.lt.u32.totalorder %s3141_s23, %s3136_s30 }
 0x11b   : > { %p3145_p2 = scmp.lt.u32.totalorder %s3136_s30, %s3731_s3 }
 0x11c   : > { %p3139_p11 = pnand %p3138_p9, %p3137_p3  ;;  %p3144_p0 = por %p3143_p13, %p3142_p8 }
 0x11e   : > { %p3140_p7 = pneg %p3139_p11  ;;  %p3146_p1 = por %p3145_p2, %p3144_p0 }
 0x120   : > { %p3147_p10 = pnand %p3146_p1, %p3140_p7 }
 0x122   : > { %3150 = shalt.err (!%p3147_p10)
}
 0x123   : > { %s3151_s8 = scalar_lea.vmem %s3733_s4, 1024  ;;  %s3322_s22 = smov [#allocation7]  }
 0x124   : > { %p3152_p6 = scmp.ne.s32.totalorder %s3733_s4, %s3151_s8  ;;  %s3156_s9 = sshll.u32 %s3322_s22, 4  ;;  %s3157_s9 = int_to_ptr.vmem [resolvable:$false] %s3156_s9 }
 0x125   : > { %s3158_s16 = scalar_lea.vmem %s3157_s9, 2048  ;;  %p3159_p4 = scmp.lt.s32.totalorder %s3733_s4, %s3157_s9 }
 0x126   : > { %p3154_p3 = pnand %p3152_p6, %p3138_p9  ;;  %p3160_p8 = scmp.lt.s32.totalorder %s3158_s16, %s3151_s8 }
 0x128   : > { %p3155_p11 = pneg %p3154_p3  ;;  %p3161_p13 = por %p3160_p8, %p3159_p4 }
 0x12a   : > { %p3162_p0 = pnand %p3161_p13, %p3155_p11 }
 0x12c   : > { %3165 = shalt.err (!%p3162_p0)
}
 0x12d   : > { %2675 = dma.hbm_to_vmem [thread:$0]  (!%p3737_p5), %s3731_s3, 1024, %s3733_s4, %s3741_s27, %s4366_s21, %s4366_s21, %s4365_s26  }
 0x12e   : > { %s4375_s30 = sld [smem:[#allocation30_spill]] }
 0x134   : > { %p4376_p9 = scmp.ne.s32.totalorder %s4375_s30, 0 }
 0x135   : > { %s3775_s23 = sand.u32 (!%p4376_p9), 1, %s3284_s13  }
 0x136   : > { %419 = sbr.rel (%p4376_p9) target bundleno = 2263 (0x8d7), region = 56  ;;  %s2143_s28 = sshll.u32 (!%p4376_p9), %s3775_s23, 7 }
 0x137   : > { %s422_s8 = scalar_lea.sflag (!%p4376_p9), [#allocation5], %s3775_s23  ;;  %s3779_s22 = scalar_lea.vmem (!%p4376_p9), [#allocation4], %s2143_s28 }
 0x13d   : > { %3239 = dma.done.wait (%p3636_p12), %s422_s8, 2048  }
 0x13e   : > { %3241 = vsyncadd (%p3636_p12), %s422_s8, 4294965248  ;;  %s430_s26 = sand.u32 1, %s3433_s20   ;;  %s432_s21 = sand.u32 1, %s3272_s10  }
 0x13f   : > { %s2144_s3 = sshll.u32 %s432_s21, 6  ;;  %s431_s4 = scalar_lea.sflag [#allocation8], %s430_s26 }
 0x140   : > { %s3787_s6 = scalar_lea.vmem [#allocation7], %s2144_s3  ;;  %p4377_p4 = scmp.ne.s32.totalorder %s4371_s15, 0 }
 0x142   : > { %3243 = dma.done.wait (%p4377_p4), %s431_s4, 1024  }
 0x143   : > { %3245 = vsyncadd (%p4377_p4), %s431_s4, 4294966272  ;;  %p4378_p5 = scmp.eq.s32.totalorder %s3433_s20, 0 }
 0x145   : > { %3247 = dma.done.wait (%p4378_p5), [#allocation8], 16   ;;  %p4379_p7 = pmov %p4378_p5 }
 0x146   : > { %p4380_p12 = pmov %p4378_p5 }
 0x147   : > { %3249 = vsyncadd (%p4379_p7), [#allocation8], 4294967280 }
 0x148   : > { %3251 = dma.done.wait (%p4380_p12), [#allocation11], 32   ;;  %p4381_p2 = pmov %p4378_p5 }
 0x14a   : > { %3253 = vsyncadd (%p4381_p2), [#allocation11], 4294967264  ;;  %p4382_p1 = pmov %p4381_p2 }
 0x14c   : > { %3255 = dma.done.wait (%p4382_p1), [#allocation14], 2064   ;;  %p4383_p10 = pmov %p4382_p1 }
 0x14d   : > { %p4384_p6 = pmov %p4382_p1 }
 0x14e   : > { %3257 = vsyncadd (%p4383_p10), [#allocation14], 4294965232 }
 0x14f   : > { %3259 = dma.done.wait (%p4384_p6), [#allocation17], 4096   ;;  %p4385_p3 = pmov %p4382_p1 }
 0x150   : > { %s3809_s25 = scalar_lea.vmem [#allocation19], %s2143_s28  ;;  %s4386_s15 = sld [smem:[#allocation28_spill]] }
 0x151   : > { %3261 = vsyncadd (%p4385_p3), [#allocation17], 4294963200 }
 0x156   : > { %p2153_p11 = scmp.ne.s32.totalorder %s4386_s15, 0 }
 0x157   : > { %v508_v0 = vld [vmem:[%s3787_s6] sm:$0xff] (!%p2153_p11)  ;;  %vm518_vm0 = vcmask (!%p2153_p11), 523264   ;;  %v509_v1 = vld [vmem:[%s3787_s6 + $0x8] sm:$0xff] (!%p2153_p11)  ;;  %v510_v8 = vld [vmem:[%s3787_s6 + $0x10] sm:$0xff] (!%p2153_p11) }
 0x158   : > { %507 = sbr.rel (%p2153_p11) target bundleno = 887 (0x377), region = 96  ;;  %v512_v2 = vld [vmem:[%s3787_s6 + $0x20] sm:$0xff] (!%p2153_p11)  ;;  %v519_v3 = vsel (!%p2153_p11), %vm518_vm0, %v508_v0, 0.0  ;;  %v522_v4 = vsel (!%p2153_p11), %vm518_vm0, %v509_v1, 0.0  ;;  %v513_v5 = vld [vmem:[%s3787_s6 + $0x28] sm:$0xff] (!%p2153_p11)  ;;  %v514_v9 = vld [vmem:[%s3787_s6 + $0x30] sm:$0xff] (!%p2153_p11) }
 0x159   : > { %520 = vadd.xlane.f32.xlu0 (!%p2153_p11), %v519_v3  ;;  %523 = vadd.xlane.f32.xlu1 (!%p2153_p11), %v522_v4  ;;  %v531_v6 = vsel (!%p2153_p11), %vm518_vm0, %v512_v2, 0.0  ;;  %v534_v7 = vsel (!%p2153_p11), %vm518_vm0, %v513_v5, 0.0  ;;  %v525_v10 = vsel (!%p2153_p11), %vm518_vm0, %v510_v8, 0.0  ;;  %v537_v11 = vsel (!%p2153_p11), %vm518_vm0, %v514_v9, 0.0  ;;  %v511_v12 = vld [vmem:[%s3787_s6 + $0x18] sm:$0xff] (!%p2153_p11)  ;;  %v653_v56 = vld [vmem:[#allocation16 + $0x8] sm:$0xff] (!%p2153_p11) }
 0x15a   : > { %v515_v13 = vld [vmem:[%s3787_s6 + $0x38] sm:$0xff] (!%p2153_p11)  ;;  %v528_v14 = vsel (!%p2153_p11), %vm518_vm0, %v511_v12, 0.0  ;;  %v655_v57 = vld [vmem:[#allocation16 + $0x18] sm:$0xff] (!%p2153_p11)  ;;  %v652_v59 = vld [vmem:[#allocation16] sm:$0xff] (!%p2153_p11) }
 0x15b   : > { %v540_v15 = vsel (!%p2153_p11), %vm518_vm0, %v515_v13, 0.0  ;;  %v2493_v58 = vpack.c.bf16 (!%p2153_p11), %v655_v57, %v653_v56  ;;  %v654_v60 = vld [vmem:[#allocation16 + $0x10] sm:$0xff] (!%p2153_p11)  ;;  %v657_v62 = vld [vmem:[#allocation16 + $0x28] sm:$0xff] (!%p2153_p11)  ;;  %v659_v63 = vld [vmem:[#allocation16 + $0x38] sm:$0xff] (!%p2153_p11) }
 0x15c   : > { %v2495_v61 = vpack.c.bf16 (!%p2153_p11), %v654_v60, %v652_v59  ;;  %v661_v4 = vld [vmem:[#allocation16 + $0x48] sm:$0xff] (!%p2153_p11) }
 0x15d   : > { %532 = vadd.xlane.f32.xlu0 (!%p2153_p11), %v531_v6  ;;  %535 = vadd.xlane.f32.xlu1 (!%p2153_p11), %v534_v7  ;;  %v660_v7 = vld [vmem:[#allocation16 + $0x40] sm:$0xff] (!%p2153_p11) }
 0x15e   : > { %2494 = vmatprep.subr.bf16.mxu0 (!%p2153_p11), %v2493_v58  ;;  %2605 = vmatprep.subr.bf16.mxu1 (!%p2153_p11), %v2493_v58 }
 0x15f   : > { %2496 = vmatpush1.bf16.msra.mxu0 %v2495_v61  ;;  %2609 = vmatpush1.bf16.msra.mxu1 %v2495_v61 }
 0x161   : > { %526 = vadd.xlane.f32.xlu0 %v525_v10  ;;  %538 = vadd.xlane.f32.xlu1 %v537_v11  ;;  %v665_v10 = vld [vmem:[#allocation16 + $0x68] sm:$0xff]  ;;  %v667_v11 = vld [vmem:[#allocation16 + $0x78] sm:$0xff] }
 0x165   : > { %529 = vadd.xlane.f32.xlu0 %v528_v14  ;;  %541 = vadd.xlane.f32.xlu1 %v540_v15  ;;  %v666_v14 = vld [vmem:[#allocation16 + $0x70] sm:$0xff] }
 0x1e6   : > { %v521_v16 = vpop.xlane.xlu0 %520  ;;  %v524_v17 = vpop.xlane.xlu1 %523 }
 0x1e7   : > { %v544_v18 = vmul.f32 0.015625, %v521_v16  ;;  %v545_v19 = vmul.f32 0.015625, %v524_v17  ;;  %v3323_v16 = vmov 0.0  }
 0x1e8   : > { %756 = vmatprep.mubr.f32.mxu0 %v3323_v16  ;;  %780 = vmatprep.mubr.f32.mxu1 %v3323_v16 }
 0x1e9   : > { %v3828_v20 = vsub.f32 %v508_v0, %v544_v18  ;;  %v3830_v21 = vsub.f32 %v509_v1, %v545_v19  ;;  %v2497_v0 = vpack.c.bf16 %v659_v63, %v657_v62  ;;  %v656_v1 = vld [vmem:[#allocation16 + $0x20] sm:$0xff] }
 0x1ea   : > { %v533_v22 = vpop.xlane.xlu0 %532  ;;  %v536_v23 = vpop.xlane.xlu1 %535 }
 0x1eb   : > { %v548_v24 = vmul.f32 0.015625, %v533_v22  ;;  %v549_v25 = vmul.f32 0.015625, %v536_v23  ;;  %v560_v26 = vmul.f32 %v3828_v20, %v3828_v20  ;;  %v561_v27 = vmul.f32 %v3830_v21, %v3830_v21  ;;  %2498 = vmatprep.subr.bf16.mxu0 %v2497_v0  ;;  %2606 = vmatprep.subr.bf16.mxu1 %v2497_v0 }
 0x1ed   : > { %v3836_v28 = vsub.f32 %v512_v2, %v548_v24  ;;  %v3838_v29 = vsub.f32 %v513_v5, %v549_v25  ;;  %v568_v30 = vsel %vm518_vm0, %v560_v26, 0.0  ;;  %v571_v33 = vsel %vm518_vm0, %v561_v27, 0.0  ;;  %v658_v2 = vld [vmem:[#allocation16 + $0x30] sm:$0xff]  ;;  %v663_v5 = vld [vmem:[#allocation16 + $0x58] sm:$0xff] }
 0x1ee   : > { %569 = vadd.xlane.f32.xlu0 %v568_v30  ;;  %v527_v31 = vpop.xlane.xlu0 %526  ;;  %v539_v32 = vpop.xlane.xlu1 %538  ;;  %v2499_v3 = vpack.c.bf16 %v658_v2, %v656_v1  ;;  %v2501_v6 = vpack.c.bf16 %v663_v5, %v661_v4 }
 0x1ef   : > { %v546_v34 = vmul.f32 0.015625, %v527_v31  ;;  %v550_v35 = vmul.f32 0.015625, %v539_v32  ;;  %v564_v36 = vmul.f32 %v3836_v28, %v3836_v28  ;;  %v565_v37 = vmul.f32 %v3838_v29, %v3838_v29 }
 0x1f0   : > { %2500 = vmatpush1.bf16.msra.mxu0 %v2499_v3  ;;  %2610 = vmatpush1.bf16.msra.mxu1 %v2499_v3 }
 0x1f1   : > { %v3846_v38 = vsub.f32 %v510_v8, %v546_v34  ;;  %v3848_v39 = vsub.f32 %v514_v9, %v550_v35  ;;  %v580_v40 = vsel %vm518_vm0, %v564_v36, 0.0  ;;  %v583_v43 = vsel %vm518_vm0, %v565_v37, 0.0  ;;  %v662_v8 = vld [vmem:[#allocation16 + $0x50] sm:$0xff]  ;;  %2502 = vmatprep.subr.bf16.mxu0 %v2501_v6  ;;  %2607 = vmatprep.subr.bf16.mxu1 %v2501_v6 }
 0x1f2   : > { %572 = vadd.xlane.f32.xlu0 %v571_v33  ;;  %581 = vadd.xlane.f32.xlu1 %v580_v40  ;;  %v530_v41 = vpop.xlane.xlu0 %529  ;;  %v542_v42 = vpop.xlane.xlu1 %541  ;;  %v2503_v9 = vpack.c.bf16 %v662_v8, %v660_v7 }
 0x1f3   : > { %v547_v44 = vmul.f32 0.015625, %v530_v41  ;;  %v551_v45 = vmul.f32 0.015625, %v542_v42  ;;  %v562_v46 = vmul.f32 %v3846_v38, %v3846_v38  ;;  %v566_v47 = vmul.f32 %v3848_v39, %v3848_v39 }
 0x1f4   : > { %2504 = vmatpush1.bf16.msra.mxu0 %v2503_v9  ;;  %2611 = vmatpush1.bf16.msra.mxu1 %v2503_v9 }
 0x1f5   : > { %v3856_v48 = vsub.f32 %v511_v12, %v547_v44  ;;  %v3858_v49 = vsub.f32 %v515_v13, %v551_v45  ;;  %v574_v50 = vsel %vm518_vm0, %v562_v46, 0.0  ;;  %v586_v51 = vsel %vm518_vm0, %v566_v47, 0.0  ;;  %v664_v13 = vld [vmem:[#allocation16 + $0x60] sm:$0xff]  ;;  %v2154_v45 = vld [vmem:[#allocation12] ss:$0 sm:$0xff] }
 0x1f6   : > { %584 = vadd.xlane.f32.xlu1 %v583_v43  ;;  %575 = vadd.xlane.f32.xlu0 %v574_v50  ;;  %v2505_v12 = vpack.c.bf16 %v667_v11, %v665_v10  ;;  %v2507_v15 = vpack.c.bf16 %v666_v14, %v664_v13 }
 0x1f7   : > { %v563_v52 = vmul.f32 %v3856_v48, %v3856_v48  ;;  %v567_v53 = vmul.f32 %v3858_v49, %v3858_v49 }
 0x1f8   : > { %2506 = vmatprep.subr.bf16.mxu0 %v2505_v12  ;;  %2608 = vmatprep.subr.bf16.mxu1 %v2505_v12 }
 0x1f9   : > { %v577_v54 = vsel %vm518_vm0, %v563_v52, 0.0  ;;  %v589_v55 = vsel %vm518_vm0, %v567_v53, 0.0  ;;  %2508 = vmatpush1.bf16.msra.mxu0 %v2507_v15  ;;  %2612 = vmatpush1.bf16.msra.mxu1 %v2507_v15 }
 0x1fa   : > { %587 = vadd.xlane.f32.xlu1 %v586_v51  ;;  %578 = vadd.xlane.f32.xlu0 %v577_v54  ;;  %v2155_v51 = vld [vmem:[#allocation13] ss:$0 sm:$0xff] }
 0x1fe   : > { %590 = vadd.xlane.f32.xlu1 %v589_v55 }
 0x27b   : > { %v570_v17 = vpop.xlane.xlu0 %569 }
 0x27c   : > { %v592_v18 = vmul.f32 0.015625, %v570_v17 }
 0x27e   : > { %v600_v19 = vadd.f32 1e-05, %v592_v18 }
 0x27f   : > { %v582_v22 = vpop.xlane.xlu1 %581  ;;  %v573_v23 = vpop.xlane.xlu0 %572 }
 0x280   : > { %2798 = vrsqrt.f32 %v600_v19  ;;  %v596_v24 = vmul.f32 0.015625, %v582_v22  ;;  %v593_v25 = vmul.f32 0.015625, %v573_v23 }
 0x282   : > { %v604_v26 = vadd.f32 1e-05, %v596_v24  ;;  %v601_v27 = vadd.f32 1e-05, %v593_v25 }
 0x283   : > { %v585_v30 = vpop.xlane.xlu1 %584  ;;  %v576_v31 = vpop.xlane.xlu0 %575 }
 0x284   : > { %2800 = vrsqrt.f32 %v604_v26  ;;  %v597_v32 = vmul.f32 0.015625, %v585_v30  ;;  %v594_v33 = vmul.f32 0.015625, %v576_v31 }
 0x285   : > { %2802 = vrsqrt.f32 %v601_v27 }
 0x286   : > { %v605_v34 = vadd.f32 1e-05, %v597_v32  ;;  %v602_v35 = vadd.f32 1e-05, %v594_v33 }
 0x287   : > { %v588_v36 = vpop.xlane.xlu1 %587  ;;  %v579_v37 = vpop.xlane.xlu0 %578 }
 0x288   : > { %2804 = vrsqrt.f32 %v605_v34  ;;  %v598_v40 = vmul.f32 0.015625, %v588_v36  ;;  %v595_v41 = vmul.f32 0.015625, %v579_v37 }
 0x289   : > { %2806 = vrsqrt.f32 %v602_v35 }
 0x28a   : > { %v2799_v42 = vpop.eup %2798  ;;  %v606_v43 = vadd.f32 1e-05, %v598_v40  ;;  %v603_v44 = vadd.f32 1e-05, %v595_v41 }
 0x28b   : > { %v591_v46 = vpop.xlane.xlu1 %590  ;;  %v616_v47 = vmul.f32 %v2799_v42, %v3828_v20 }
 0x28c   : > { %2808 = vrsqrt.f32 %v606_v43  ;;  %v599_v50 = vmul.f32 0.015625, %v591_v46 }
 0x28d   : > { %2810 = vrsqrt.f32 %v603_v44  ;;  %v630_v52 = vmul.f32 %v2154_v45, %v616_v47 }
 0x28e   : > { %v2801_v53 = vpop.eup %2800  ;;  %v607_v54 = vadd.f32 1e-05, %v599_v50 }
 0x28f   : > { %v2803_v55 = vpop.eup %2802  ;;  %v644_v56 = vadd.f32 %v2155_v51, %v630_v52  ;;  %v620_v57 = vmul.f32 %v2801_v53, %v3836_v28 }
 0x290   : > { %2812 = vrsqrt.f32 %v607_v54  ;;  %v617_v58 = vmul.f32 %v2803_v55, %v3830_v21 }
 0x291   : > { %2156 = vmatmul.mubr.msk.f32.vlgmr.msra.gmra.mrb[0].mxu0 %vm518_vm0, %v644_v56  ;;  %v634_v59 = vmul.f32 %v2154_v45, %v620_v57 }
 0x292   : > { %v2805_v60 = vpop.eup %2804  ;;  %762 = vmatprep.mubr.f32.mxu0 %v3323_v16  ;;  %v631_v20 = vmul.f32 %v2154_v45, %v617_v58 }
 0x293   : > { %v2807_v61 = vpop.eup %2806  ;;  %v648_v62 = vadd.f32 %v2155_v51, %v634_v59  ;;  %v621_v63 = vmul.f32 %v2805_v60, %v3838_v29 }
 0x294   : > { %v645_v0 = vadd.f32 %v2155_v51, %v631_v20  ;;  %v618_v1 = vmul.f32 %v2807_v61, %v3846_v38 }
 0x295   : > { %2160 = vmatmul.mubr.msk.f32.vlgmr.msra.gmra.mrb[0].mxu1 %vm518_vm0, %v648_v62  ;;  %v635_v28 = vmul.f32 %v2154_v45, %v621_v63 }
 0x296   : > { %v2809_v2 = vpop.eup %2808  ;;  %2157 = vmatmul.mubr.msk.f32.gmra.mrb[2].mxu0 %vm518_vm0, %v645_v0  ;;  %786 = vmatprep.mubr.f32.mxu1 %v3323_v16  ;;  %v632_v21 = vmul.f32 %v2154_v45, %v618_v1 }
 0x297   : > { %v2811_v3 = vpop.eup %2810  ;;  %768 = vmatprep.mubr.f32.mxu0 %v3323_v16  ;;  %v649_v4 = vadd.f32 %v2155_v51, %v635_v28  ;;  %v622_v5 = vmul.f32 %v2809_v2, %v3848_v39 }
 0x298   : > { %v646_v6 = vadd.f32 %v2155_v51, %v632_v21  ;;  %v619_v29 = vmul.f32 %v2811_v3, %v3856_v48 }
 0x299   : > { %2161 = vmatmul.mubr.msk.f32.gmra.mrb[2].mxu1 %vm518_vm0, %v649_v4  ;;  %v636_v38 = vmul.f32 %v2154_v45, %v622_v5 }
 0x29a   : > { %v2813_v7 = vpop.eup %2812  ;;  %2158 = vmatmul.mubr.msk.f32.gmra.mrb[4].mxu0 %vm518_vm0, %v646_v6  ;;  %792 = vmatprep.mubr.f32.mxu1 %v3323_v16  ;;  %v633_v8 = vmul.f32 %v2154_v45, %v619_v29 }
 0x29b   : > { %774 = vmatprep.mubr.f32.mxu0 %v3323_v16  ;;  %v650_v9 = vadd.f32 %v2155_v51, %v636_v38  ;;  %v623_v10 = vmul.f32 %v2813_v7, %v3858_v49 }
 0x29c   : > { %v647_v11 = vadd.f32 %v2155_v51, %v633_v8 }
 0x29d   : > { %2162 = vmatmul.mubr.msk.f32.gmra.mrb[4].mxu1 %vm518_vm0, %v650_v9  ;;  %v637_v39 = vmul.f32 %v2154_v45, %v623_v10 }
 0x29e   : > { %2159 = vmatmul.mubr.msk.f32.gmra.mrb[6].mxu0 %vm518_vm0, %v647_v11  ;;  %798 = vmatprep.mubr.f32.mxu1 %v3323_v16 }
 0x29f   : > { %v651_v48 = vadd.f32 %v2155_v51, %v637_v39 }
 0x2a1   : > { %2163 = vmatmul.mubr.msk.f32.gmra.mrb[6].mxu1 %vm518_vm0, %v651_v48 }
 0x364   : > { %v758_v12 = vpop.f32.mrb[0].mxu0 }
 0x365   : > { %805 = vst [vmem:[#allocation2] sm:$0xff] %v758_v12  ;;  %v760_v13 = vpop.f32.mrb[1].mxu0 }
 0x366   : > { %813 = vst [vmem:[#allocation3] sm:$0xff] %v760_v13 }
 0x368   : > { %v782_v14 = vpop.f32.mrb[0].mxu1 }
 0x369   : > { %v764_v15 = vpop.f32.mrb[2].mxu0  ;;  %809 = vst [vmem:[#allocation2 + $0x20] sm:$0xff] %v782_v14  ;;  %v784_v17 = vpop.f32.mrb[1].mxu1 }
 0x36a   : > { %806 = vst [vmem:[#allocation2 + $0x8] sm:$0xff] %v764_v15  ;;  %v766_v49 = vpop.f32.mrb[3].mxu0  ;;  %817 = vst [vmem:[#allocation3 + $0x20] sm:$0xff] %v784_v17 }
 0x36b   : > { %814 = vst [vmem:[#allocation3 + $0x8] sm:$0xff] %v766_v49 }
 0x36c   : > { %v788_v18 = vpop.f32.mrb[2].mxu1 }
 0x36d   : > { %v770_v19 = vpop.f32.mrb[4].mxu0  ;;  %810 = vst [vmem:[#allocation2 + $0x28] sm:$0xff] %v788_v18  ;;  %v790_v22 = vpop.f32.mrb[3].mxu1 }
 0x36e   : > { %807 = vst [vmem:[#allocation2 + $0x10] sm:$0xff] %v770_v19  ;;  %v772_v16 = vpop.f32.mrb[5].mxu0  ;;  %818 = vst [vmem:[#allocation3 + $0x28] sm:$0xff] %v790_v22 }
 0x36f   : > { %815 = vst [vmem:[#allocation3 + $0x10] sm:$0xff] %v772_v16 }
 0x370   : > { %v794_v23 = vpop.f32.mrb[4].mxu1 }
 0x371   : > { %v776_v24 = vpop.f32.mrb[6].mxu0  ;;  %811 = vst [vmem:[#allocation2 + $0x30] sm:$0xff] %v794_v23  ;;  %v796_v25 = vpop.f32.mrb[5].mxu1 }
 0x372   : > { %808 = vst [vmem:[#allocation2 + $0x18] sm:$0xff] %v776_v24  ;;  %v778_v26 = vpop.f32.mrb[7].mxu0  ;;  %819 = vst [vmem:[#allocation3 + $0x30] sm:$0xff] %v796_v25 }
 0x373   : > { %816 = vst [vmem:[#allocation3 + $0x18] sm:$0xff] %v778_v26 }
 0x374   : > { %v800_v27 = vpop.f32.mrb[6].mxu1 }
 0x375   : > { %812 = vst [vmem:[#allocation2 + $0x38] sm:$0xff] %v800_v27  ;;  %v802_v30 = vpop.f32.mrb[7].mxu1 }
 0x376   : > { %820 = vst [vmem:[#allocation3 + $0x38] sm:$0xff] %v802_v30 }
 0x377 PF: > { %v821_v31 = vld [vmem:[%s3779_s22] sm:$0xff]  ;;  %v823_v32 = vld [vmem:[%s3779_s22 + $0x10] sm:$0xff]  ;;  %v822_v33 = vld [vmem:[%s3779_s22 + $0x8] sm:$0xff]  ;;  %vm1374_vm1 = vcmask 523264   ;;  %s4387_s20 = sld [smem:[#allocation28_spill]]  ;;  %s4388_s27 = sld [smem:[#allocation29_spill]] }
 0x378   : > { %839 = vadd.xlane.f32.xlu0 %v821_v31  ;;  %843 = vadd.xlane.f32.xlu1 %v823_v32  ;;  %v824_v34 = vld [vmem:[%s3779_s22 + $0x18] sm:$0xff]  ;;  %v825_v35 = vld [vmem:[%s3779_s22 + $0x20] sm:$0xff]  ;;  %v826_v36 = vld [vmem:[%s3779_s22 + $0x28] sm:$0xff]  ;;  %s1945_s8 = sshll.u32 %s3809_s25, 4  ;;  %s4389_s21 = sld [smem:[#allocation40_spill]]  ;;  %s4245_s8 = int_to_ptr.vmem [resolvable:$true] %s1945_s8 }
 0x379   : > { %v827_v37 = vld [vmem:[%s3779_s22 + $0x30] sm:$0xff]  ;;  %v828_v40 = vld [vmem:[%s3779_s22 + $0x38] sm:$0xff]  ;;  %v3901_v41 = vld [vmem:[%s3779_s22 + $0x40] sm:$0xff]  ;;  %s1930_s4 = scalar_lea.sflag [#allocation6], %s3775_s23  ;;  %s3166_s6 = scalar_lea.vmem %s4245_s8, 2048 }
 0x37a   : > { %v3904_v42 = vld [vmem:[%s3779_s22 + $0x48] sm:$0xff]  ;;  %v3909_v43 = vld [vmem:[%s3779_s22 + $0x50] sm:$0xff]  ;;  %v3912_v44 = vld [vmem:[%s3779_s22 + $0x58] sm:$0xff]  ;;  %p3167_p8 = scmp.ne.s32.totalorder %s4245_s8, %s3166_s6  ;;  %p4390_p13 = scmp.ne.s32.totalorder %s4362_s1, 0 }
 0x37b   : > { %v3917_v45 = vld [vmem:[%s3779_s22 + $0x60] sm:$0xff]  ;;  %v3920_v46 = vld [vmem:[%s3779_s22 + $0x68] sm:$0xff]  ;;  %v3925_v47 = vld [vmem:[%s3779_s22 + $0x70] sm:$0xff]  ;;  %s3324_s15 = smov [#allocation19]  }
 0x37c   : > { %841 = vadd.xlane.f32.xlu0 %v822_v33  ;;  %845 = vadd.xlane.f32.xlu1 %v824_v34  ;;  %v3928_v50 = vld [vmem:[%s3779_s22 + $0x78] sm:$0xff]  ;;  %v1060_v51 = vld [vmem:[#allocation15] sm:$0xff]  ;;  %v1061_v52 = vld [vmem:[#allocation15 + $0x8] sm:$0xff]  ;;  %p3168_p0 = pnand %p3167_p8, %p4390_p13 }
 0x37d   : > { %v1062_v53 = vld [vmem:[#allocation15 + $0x10] sm:$0xff]  ;;  %v2509_v54 = vpack.c.bf16 %v1061_v52, %v1060_v51  ;;  %v1063_v55 = vld [vmem:[#allocation15 + $0x18] sm:$0xff]  ;;  %v1064_v25 = vld [vmem:[#allocation15 + $0x20] sm:$0xff]  ;;  %s2183_s9 = sshll.u32 %s4387_s20, 4  ;;  %s2184_s16 = sshll.u32 %s4388_s27, 5 }
 0x37e   : > { %v2513_v56 = vpack.c.bf16 %v1063_v55, %v1062_v53  ;;  %v1065_v26 = vld [vmem:[#allocation15 + $0x28] sm:$0xff]  ;;  %v1067_v51 = vld [vmem:[#allocation15 + $0x38] sm:$0xff]  ;;  %s1942_s30 = sadd.s32 %s2184_s16, %s2183_s9  ;;  %p3169_p9 = pneg %p3168_p0 }
 0x37f   : > { %2510 = vmatprep.subr.bf16.mxu0 %v2509_v54  ;;  %s2185_s28 = sshll.u32 %s1942_s30, 7  ;;  %s3170_s20 = sshll.u32 %s3324_s15, 4  ;;  %s3171_s20 = int_to_ptr.vmem [resolvable:$false] %s3170_s20 }
 0x380   : > { %847 = vadd.xlane.f32.xlu0 %v825_v35  ;;  %849 = vadd.xlane.f32.xlu1 %v826_v36  ;;  %s4243_s3 = scalar_lea.hbm %s4389_s21, %s2185_s28  ;;  %s3172_s27 = scalar_lea.vmem %s3171_s20, 4096 }
 0x381   : > { %2512 = vmatpush3.bf16.msra.mxu0 %v2509_v54  ;;  %p3173_p4 = scmp.lt.s32.totalorder %s4245_s8, %s3171_s20  ;;  %p3174_p5 = scmp.lt.s32.totalorder %s3172_s27, %s3166_s6 }
 0x382   : > { %2514 = vmatprep.subr.bf16.mxu0 %v2513_v56 }
 0x383   : > { %p3175_p7 = por %p3174_p5, %p3173_p4 }
 0x384   : > { %851 = vadd.xlane.f32.xlu0 %v827_v37  ;;  %853 = vadd.xlane.f32.xlu1 %v828_v40 }
 0x385   : > { %2516 = vmatpush3.bf16.msra.mxu0 %v2513_v56  ;;  %p3176_p12 = pnand %p3175_p7, %p3169_p9 }
 0x388   : > { %855 = vadd.xlane.f32.xlu0 %v3901_v41  ;;  %857 = vadd.xlane.f32.xlu1 %v3904_v42 }
 0x38c   : > { %859 = vadd.xlane.f32.xlu0 %v3909_v43  ;;  %861 = vadd.xlane.f32.xlu1 %v3912_v44 }
 0x390   : > { %863 = vadd.xlane.f32.xlu0 %v3917_v45  ;;  %865 = vadd.xlane.f32.xlu1 %v3920_v46 }
 0x394   : > { %867 = vadd.xlane.f32.xlu0 %v3925_v47  ;;  %869 = vadd.xlane.f32.xlu1 %v3928_v50 }
 0x405   : > { %v840_v57 = vpop.xlane.xlu0 %839  ;;  %v844_v58 = vpop.xlane.xlu1 %843 }
 0x406   : > { %v872_v59 = vmul.f32 0.0078125, %v840_v57  ;;  %v874_v60 = vmul.f32 0.0078125, %v844_v58 }
 0x408   : > { %v3932_v20 = vsub.f32 %v821_v31, %v872_v59  ;;  %v3934_v61 = vsub.f32 %v823_v32, %v874_v60  ;;  %v2517_v31 = vpack.c.bf16 %v1065_v26, %v1064_v25  ;;  %v1068_v59 = vld [vmem:[#allocation15 + $0x40] sm:$0xff]  ;;  %v1069_v60 = vld [vmem:[#allocation15 + $0x48] sm:$0xff]  ;;  %v1228_v25 = vld [vmem:[#allocation2 + $0x38] sm:$0xff] }
 0x409   : > { %v842_v62 = vpop.xlane.xlu0 %841  ;;  %v846_v63 = vpop.xlane.xlu1 %845 }
 0x40a   : > { %v873_v0 = vmul.f32 0.0078125, %v842_v62  ;;  %v904_v1 = vmul.f32 %v3932_v20, %v3932_v20  ;;  %v875_v28 = vmul.f32 0.0078125, %v846_v63  ;;  %v906_v3 = vmul.f32 %v3934_v61, %v3934_v61  ;;  %2518 = vmatprep.subr.bf16.mxu0 %v2517_v31 }
 0x40b   : > { %2520 = vmatpush3.bf16.msra.mxu0 %v2517_v31 }
 0x40c   : > { %v3938_v2 = vsub.f32 %v822_v33, %v873_v0  ;;  %920 = vadd.xlane.f32.xlu0 %v904_v1  ;;  %v3940_v21 = vsub.f32 %v824_v34, %v875_v28 }
 0x40d   : > { %v848_v4 = vpop.xlane.xlu0 %847  ;;  %v850_v5 = vpop.xlane.xlu1 %849 }
 0x40e   : > { %v876_v6 = vmul.f32 0.0078125, %v848_v4  ;;  %v905_v29 = vmul.f32 %v3938_v2, %v3938_v2  ;;  %v877_v38 = vmul.f32 0.0078125, %v850_v5  ;;  %v907_v9 = vmul.f32 %v3940_v21, %v3940_v21  ;;  %v1071_v4 = vld [vmem:[#allocation15 + $0x58] sm:$0xff] }
 0x410   : > { %v3946_v7 = vsub.f32 %v825_v35, %v876_v6  ;;  %924 = vadd.xlane.f32.xlu0 %v906_v3  ;;  %922 = vadd.xlane.f32.xlu1 %v905_v29  ;;  %v3948_v8 = vsub.f32 %v826_v36, %v877_v38  ;;  %v1070_v3 = vld [vmem:[#allocation15 + $0x50] sm:$0xff]  ;;  %v1072_v29 = vld [vmem:[#allocation15 + $0x60] sm:$0xff] }
 0x411   : > { %v852_v10 = vpop.xlane.xlu0 %851  ;;  %v854_v11 = vpop.xlane.xlu1 %853  ;;  %v2529_v6 = vpack.c.bf16 %v1071_v4, %v1070_v3 }
 0x412   : > { %v878_v39 = vmul.f32 0.0078125, %v852_v10  ;;  %v908_v48 = vmul.f32 %v3946_v7, %v3946_v7  ;;  %v879_v12 = vmul.f32 0.0078125, %v854_v11  ;;  %v909_v15 = vmul.f32 %v3948_v8, %v3948_v8  ;;  %v1075_v10 = vld [vmem:[#allocation15 + $0x78] sm:$0xff] }
 0x414   : > { %v3954_v13 = vsub.f32 %v827_v37, %v878_v39  ;;  %926 = vadd.xlane.f32.xlu1 %v907_v9  ;;  %928 = vadd.xlane.f32.xlu0 %v908_v48  ;;  %v3956_v14 = vsub.f32 %v828_v40, %v879_v12  ;;  %v1074_v9 = vld [vmem:[#allocation15 + $0x70] sm:$0xff]  ;;  %v1221_v39 = vld [vmem:[#allocation2] sm:$0xff]  ;;  %v1222_v48 = vld [vmem:[#allocation2 + $0x8] sm:$0xff] }
 0x415   : > { %v856_v17 = vpop.xlane.xlu0 %855  ;;  %v858_v49 = vpop.xlane.xlu1 %857  ;;  %v2537_v11 = vpack.c.bf16 %v1075_v10, %v1074_v9  ;;  %v1223_v12 = vld [vmem:[#allocation2 + $0x10] sm:$0xff] }
 0x416   : > { %v880_v18 = vmul.f32 0.0078125, %v856_v17  ;;  %v910_v19 = vmul.f32 %v3954_v13, %v3954_v13  ;;  %v881_v22 = vmul.f32 0.0078125, %v858_v49  ;;  %v911_v24 = vmul.f32 %v3956_v14, %v3956_v14  ;;  %v1224_v17 = vld [vmem:[#allocation2 + $0x18] sm:$0xff] }
 0x417   : > { %v2545_v49 = vpack.c.bf16 %v1224_v17, %v1223_v12 }
 0x418   : > { %v3963_v16 = vsub.f32 %v3901_v41, %v880_v18  ;;  %930 = vadd.xlane.f32.xlu1 %v909_v15  ;;  %932 = vadd.xlane.f32.xlu0 %v910_v19  ;;  %v3966_v23 = vsub.f32 %v3904_v42, %v881_v22  ;;  %v1066_v42 = vld [vmem:[#allocation15 + $0x30] sm:$0xff]  ;;  %v2541_v15 = vpack.c.bf16 %v1222_v48, %v1221_v39  ;;  %v1225_v18 = vld [vmem:[#allocation2 + $0x20] sm:$0xff]  ;;  %v1226_v19 = vld [vmem:[#allocation2 + $0x28] sm:$0xff] }
 0x419   : > { %v860_v27 = vpop.xlane.xlu0 %859  ;;  %v862_v30 = vpop.xlane.xlu1 %861  ;;  %v2549_v22 = vpack.c.bf16 %v1226_v19, %v1225_v18 }
 0x41a   : > { %v882_v32 = vmul.f32 0.0078125, %v860_v27  ;;  %v912_v33 = vmul.f32 %v3963_v16, %v3963_v16  ;;  %v883_v34 = vmul.f32 0.0078125, %v862_v30  ;;  %v913_v37 = vmul.f32 %v3966_v23, %v3966_v23  ;;  %2542 = vmatprep.subr.bf16.mxu1 %v2541_v15 }
 0x41b   : > { %2544 = vmatpush3.bf16.xpose.msra.mxu1 %v2541_v15 }
 0x41c   : > { %v3973_v35 = vsub.f32 %v3909_v43, %v882_v32  ;;  %934 = vadd.xlane.f32.xlu1 %v911_v24  ;;  %936 = vadd.xlane.f32.xlu0 %v912_v33  ;;  %v3976_v36 = vsub.f32 %v3912_v44, %v883_v34  ;;  %v2521_v43 = vpack.c.bf16 %v1067_v51, %v1066_v42  ;;  %v1227_v24 = vld [vmem:[#allocation2 + $0x30] sm:$0xff] }
 0x41d   : > { %v864_v40 = vpop.xlane.xlu0 %863  ;;  %v866_v41 = vpop.xlane.xlu1 %865  ;;  %2546 = vmatprep.subr.bf16.mxu1 %v2545_v49  ;;  %v2553_v26 = vpack.c.bf16 %v1228_v25, %v1227_v24 }
 0x41e   : > { %v884_v52 = vmul.f32 0.0078125, %v864_v40  ;;  %v914_v53 = vmul.f32 %v3973_v35, %v3973_v35  ;;  %v885_v54 = vmul.f32 0.0078125, %v866_v41  ;;  %v915_v56 = vmul.f32 %v3976_v36, %v3976_v36  ;;  %2522 = vmatprep.subr.bf16.mxu0 %v2521_v43 }
 0x41f   : > { %2524 = vmatpush3.bf16.msra.mxu0 %v2521_v43 }
 0x420   : > { %v3983_v55 = vsub.f32 %v3917_v45, %v884_v52  ;;  %938 = vadd.xlane.f32.xlu1 %v913_v37  ;;  %940 = vadd.xlane.f32.xlu0 %v914_v53  ;;  %v3986_v44 = vsub.f32 %v3920_v46, %v885_v54  ;;  %v2525_v45 = vpack.c.bf16 %v1069_v60, %v1068_v59 }
 0x421   : > { %v868_v57 = vpop.xlane.xlu0 %867  ;;  %v870_v58 = vpop.xlane.xlu1 %869 }
 0x422   : > { %v886_v62 = vmul.f32 0.0078125, %v868_v57  ;;  %v916_v63 = vmul.f32 %v3983_v55, %v3983_v55  ;;  %v887_v0 = vmul.f32 0.0078125, %v870_v58  ;;  %v917_v28 = vmul.f32 %v3986_v44, %v3986_v44  ;;  %2526 = vmatprep.subr.bf16.mxu0 %v2525_v45 }
 0x423   : > { %2528 = vmatpush3.bf16.msra.mxu0 %v2525_v45  ;;  %2548 = vmatpush3.bf16.xpose.msra.mxu1 %v2545_v49 }
 0x424   : > { %v3993_v1 = vsub.f32 %v3925_v47, %v886_v62  ;;  %942 = vadd.xlane.f32.xlu1 %v915_v56  ;;  %944 = vadd.xlane.f32.xlu0 %v916_v63  ;;  %v3996_v46 = vsub.f32 %v3928_v50, %v887_v0  ;;  %v1073_v50 = vld [vmem:[#allocation15 + $0x68] sm:$0xff]  ;;  %v4004_v0 = vld [vmem:[#allocation9] ss:$0 sm:$0xff] }
 0x425   : > { %2530 = vmatprep.subr.bf16.mxu0 %v2529_v6  ;;  %v2533_v38 = vpack.c.bf16 %v1073_v50, %v1072_v29  ;;  %2550 = vmatprep.subr.bf16.mxu1 %v2549_v22 }
 0x426   : > { %v918_v5 = vmul.f32 %v3993_v1, %v3993_v1  ;;  %v919_v47 = vmul.f32 %v3996_v46, %v3996_v46 }
 0x427   : > { %2532 = vmatpush3.bf16.msra.mxu0 %v2529_v6  ;;  %v4007_v6 = vld [vmem:[#allocation10] ss:$0 sm:$0xff] }
 0x428   : > { %946 = vadd.xlane.f32.xlu1 %v917_v28  ;;  %948 = vadd.xlane.f32.xlu0 %v918_v5 }
 0x429   : > { %2534 = vmatprep.subr.bf16.mxu0 %v2533_v38 }
 0x42b   : > { %2536 = vmatpush3.bf16.msra.mxu0 %v2533_v38  ;;  %2552 = vmatpush3.bf16.xpose.msra.mxu1 %v2549_v22 }
 0x42c   : > { %950 = vadd.xlane.f32.xlu1 %v919_v47  ;;  %2538 = vmatprep.subr.bf16.mxu0 %v2537_v11 }
 0x42d   : > { %2554 = vmatprep.subr.bf16.mxu1 %v2553_v26 }
 0x42f   : > { %2540 = vmatpush3.bf16.msra.mxu0 %v2537_v11 }
 0x433   : > { %2556 = vmatpush3.bf16.xpose.msra.mxu1 %v2553_v26 }
 0x499   : > { %v921_v27 = vpop.xlane.xlu0 %920 }
 0x49a   : > { %v952_v30 = vmul.f32 0.0078125, %v921_v27 }
 0x49c   : > { %v968_v31 = vadd.f32 1e-05, %v952_v30 }
 0x49d   : > { %v923_v32 = vpop.xlane.xlu1 %922  ;;  %v925_v33 = vpop.xlane.xlu0 %924 }
 0x49e   : > { %2814 = vrsqrt.f32 %v968_v31  ;;  %v953_v34 = vmul.f32 0.0078125, %v923_v32  ;;  %v954_v37 = vmul.f32 0.0078125, %v925_v33 }
 0x4a0   : > { %v969_v40 = vadd.f32 1e-05, %v953_v34  ;;  %v970_v41 = vadd.f32 1e-05, %v954_v37 }
 0x4a1   : > { %v927_v42 = vpop.xlane.xlu1 %926  ;;  %v929_v51 = vpop.xlane.xlu0 %928 }
 0x4a2   : > { %2816 = vrsqrt.f32 %v969_v40  ;;  %v955_v52 = vmul.f32 0.0078125, %v927_v42  ;;  %v956_v53 = vmul.f32 0.0078125, %v929_v51 }
 0x4a3   : > { %2818 = vrsqrt.f32 %v970_v41 }
 0x4a4   : > { %v971_v54 = vadd.f32 1e-05, %v955_v52  ;;  %v972_v43 = vadd.f32 1e-05, %v956_v53 }
 0x4a5   : > { %v931_v56 = vpop.xlane.xlu1 %930  ;;  %v933_v57 = vpop.xlane.xlu0 %932 }
 0x4a6   : > { %2820 = vrsqrt.f32 %v971_v54  ;;  %v957_v58 = vmul.f32 0.0078125, %v931_v56  ;;  %v958_v59 = vmul.f32 0.0078125, %v933_v57 }
 0x4a7   : > { %2822 = vrsqrt.f32 %v972_v43 }
 0x4a8   : > { %v2815_v60 = vpop.eup %2814  ;;  %v973_v62 = vadd.f32 1e-05, %v957_v58  ;;  %v974_v63 = vadd.f32 1e-05, %v958_v59 }
 0x4a9   : > { %v935_v45 = vpop.xlane.xlu1 %934  ;;  %v937_v28 = vpop.xlane.xlu0 %936  ;;  %v1000_v3 = vmul.f32 %v2815_v60, %v3932_v20 }
 0x4aa   : > { %2824 = vrsqrt.f32 %v973_v62  ;;  %v959_v4 = vmul.f32 0.0078125, %v935_v45  ;;  %v960_v5 = vmul.f32 0.0078125, %v937_v28 }
 0x4ab   : > { %2826 = vrsqrt.f32 %v974_v63  ;;  %v1022_v47 = vmul.f32 %v4004_v0, %v1000_v3 }
 0x4ac   : > { %v2817_v29 = vpop.eup %2816  ;;  %v975_v50 = vadd.f32 1e-05, %v959_v4  ;;  %v976_v38 = vadd.f32 1e-05, %v960_v5 }
 0x4ad   : > { %v2819_v9 = vpop.eup %2818  ;;  %v939_v10 = vpop.xlane.xlu1 %938  ;;  %v4011_v39 = vadd.f32 %v4007_v6, %v1022_v47  ;;  %v1001_v48 = vmul.f32 %v2817_v29, %v3938_v2 }
 0x4ae   : > { %v941_v11 = vpop.xlane.xlu0 %940  ;;  %2828 = vrsqrt.f32 %v975_v50  ;;  %v961_v20 = vmul.f32 0.0078125, %v939_v10  ;;  %v1002_v15 = vmul.f32 %v2819_v9, %v3934_v61 }
 0x4af   : > { %v962_v12 = vmul.f32 0.0078125, %v941_v11  ;;  %2830 = vrsqrt.f32 %v976_v38  ;;  %2333 = vmatprep.mubr.f32.mxu0 %v4011_v39  ;;  %v1023_v17 = vmul.f32 %v4004_v0, %v1001_v48 }
 0x4b0   : > { %v2821_v49 = vpop.eup %2820  ;;  %v977_v18 = vadd.f32 1e-05, %v961_v20  ;;  %v1024_v22 = vmul.f32 %v4004_v0, %v1002_v15 }
 0x4b1   : > { %v978_v19 = vadd.f32 1e-05, %v962_v12  ;;  %v2823_v24 = vpop.eup %2822  ;;  %v943_v25 = vpop.xlane.xlu1 %942  ;;  %v4019_v2 = vadd.f32 %v4007_v6, %v1023_v17  ;;  %v1003_v27 = vmul.f32 %v2821_v49, %v3940_v21 }
 0x4b2   : > { %v945_v26 = vpop.xlane.xlu0 %944  ;;  %2832 = vrsqrt.f32 %v977_v18  ;;  %v963_v61 = vmul.f32 0.0078125, %v943_v25  ;;  %v4023_v31 = vadd.f32 %v4007_v6, %v1024_v22  ;;  %v1004_v33 = vmul.f32 %v2823_v24, %v3946_v7 }
 0x4b3   : > { %v964_v30 = vmul.f32 0.0078125, %v945_v26  ;;  %2834 = vrsqrt.f32 %v978_v19  ;;  %2334 = vmatmul.mubr.f32.vlgmr.msra.gmra.mrb[0].mxu0 %v4019_v2  ;;  %v1025_v32 = vmul.f32 %v4004_v0, %v1003_v27 }
 0x4b4   : > { %v2825_v34 = vpop.eup %2824  ;;  %v979_v37 = vadd.f32 1e-05, %v963_v61  ;;  %2336 = vmatprep.mubr.f32.mxu0 %v4023_v31  ;;  %v1026_v52 = vmul.f32 %v4004_v0, %v1004_v33 }
 0x4b5   : > { %v980_v40 = vadd.f32 1e-05, %v964_v30  ;;  %v2827_v41 = vpop.eup %2826  ;;  %v947_v21 = vpop.xlane.xlu1 %946  ;;  %v4030_v51 = vadd.f32 %v4007_v6, %v1025_v32  ;;  %v1005_v53 = vmul.f32 %v2825_v34, %v3948_v8 }
 0x4b6   : > { %v949_v42 = vpop.xlane.xlu0 %948  ;;  %2836 = vrsqrt.f32 %v979_v37  ;;  %v965_v54 = vmul.f32 0.0078125, %v947_v21  ;;  %v1006_v7 = vmul.f32 %v2827_v41, %v3954_v13  ;;  %v4037_v56 = vadd.f32 %v4007_v6, %v1026_v52 }
 0x4b7   : > { %v966_v43 = vmul.f32 0.0078125, %v949_v42  ;;  %2838 = vrsqrt.f32 %v980_v40  ;;  %2337 = vmatmul.mubr.f32.gmra.mrb[2].mxu0 %v4030_v51  ;;  %v1027_v57 = vmul.f32 %v4004_v0, %v1005_v53 }
 0x4b8   : > { %v2829_v58 = vpop.eup %2828  ;;  %v981_v59 = vadd.f32 1e-05, %v965_v54  ;;  %v1028_v62 = vmul.f32 %v4004_v0, %v1006_v7  ;;  %2339 = vmatprep.mubr.f32.mxu0 %v4037_v56 }
 0x4b9   : > { %v982_v60 = vadd.f32 1e-05, %v966_v43  ;;  %v2831_v63 = vpop.eup %2830  ;;  %v951_v8 = vpop.xlane.xlu1 %950  ;;  %v4043_v45 = vadd.f32 %v4007_v6, %v1027_v57  ;;  %v1007_v13 = vmul.f32 %v2829_v58, %v3956_v14 }
 0x4ba   : > { %2840 = vrsqrt.f32 %v981_v59  ;;  %v967_v28 = vmul.f32 0.0078125, %v951_v8  ;;  %v4047_v3 = vadd.f32 %v4007_v6, %v1028_v62  ;;  %v1008_v4 = vmul.f32 %v2831_v63, %v3963_v16  ;;  %v1519_v59 = vld [vmem:[#allocation3] sm:$0xff]  ;;  %v1521_v62 = vld [vmem:[#allocation3 + $0x10] sm:$0xff]  ;;  %v1522_v8 = vld [vmem:[#allocation3 + $0x18] sm:$0xff] }
 0x4bb   : > { %2842 = vrsqrt.f32 %v982_v60  ;;  %2340 = vmatmul.mubr.f32.gmra.mrb[4].mxu0 %v4043_v45  ;;  %v1029_v5 = vmul.f32 %v4004_v0, %v1007_v13  ;;  %v1520_v60 = vld [vmem:[#allocation3 + $0x8] sm:$0xff]  ;;  %v2561_v13 = vpack.c.bf16 %v1522_v8, %v1521_v62 }
 0x4bc   : > { %v2833_v47 = vpop.eup %2832  ;;  %v983_v29 = vadd.f32 1e-05, %v967_v28  ;;  %2342 = vmatprep.mubr.f32.mxu0 %v4047_v3  ;;  %v1030_v50 = vmul.f32 %v4004_v0, %v1008_v4  ;;  %v2557_v63 = vpack.c.bf16 %v1520_v60, %v1519_v59 }
 0x4bd   : > { %v2835_v38 = vpop.eup %2834  ;;  %v4055_v14 = vadd.f32 %v4007_v6, %v1029_v5  ;;  %v1009_v9 = vmul.f32 %v2833_v47, %v3966_v23 }
 0x4be   : > { %2844 = vrsqrt.f32 %v983_v29  ;;  %v4059_v16 = vadd.f32 %v4007_v6, %v1030_v50  ;;  %v1010_v10 = vmul.f32 %v2835_v38, %v3973_v35  ;;  %2558 = vmatprep.subr.bf16.mxu0 %v2557_v63 }
 0x4bf   : > { %2343 = vmatmul.mubr.f32.gmra.mrb[6].mxu0 %v4055_v14  ;;  %v1031_v11 = vmul.f32 %v4004_v0, %v1009_v9 }
 0x4c0   : > { %v2837_v48 = vpop.eup %2836  ;;  %2345 = vmatprep.mubr.f32.mxu0 %v4059_v16  ;;  %v1032_v20 = vmul.f32 %v4004_v0, %v1010_v10  ;;  %2560 = vmatpush3.bf16.msra.mxu0 %v2557_v63 }
 0x4c1   : > { %v2839_v12 = vpop.eup %2838  ;;  %v4067_v15 = vadd.f32 %v4007_v6, %v1031_v11  ;;  %v1011_v23 = vmul.f32 %v2837_v48, %v3976_v36  ;;  %2562 = vmatprep.subr.bf16.mxu0 %v2561_v13 }
 0x4c2   : > { %v4071_v17 = vadd.f32 %v4007_v6, %v1032_v20  ;;  %v1012_v35 = vmul.f32 %v2839_v12, %v3983_v55 }
 0x4c3   : > { %2346 = vmatmul.mubr.f32.gmra.mrb[8].mxu0 %v4067_v15  ;;  %v1033_v49 = vmul.f32 %v4004_v0, %v1011_v23 }
 0x4c4   : > { %v2841_v18 = vpop.eup %2840  ;;  %2348 = vmatprep.mubr.f32.mxu0 %v4071_v17  ;;  %v1034_v19 = vmul.f32 %v4004_v0, %v1012_v35  ;;  %2564 = vmatpush3.bf16.msra.mxu0 %v2561_v13 }
 0x4c5   : > { %v2843_v22 = vpop.eup %2842  ;;  %v4079_v24 = vadd.f32 %v4007_v6, %v1033_v49  ;;  %v1013_v36 = vmul.f32 %v2841_v18, %v3986_v44 }
 0x4c6   : > { %v4083_v25 = vadd.f32 %v4007_v6, %v1034_v19  ;;  %v1014_v55 = vmul.f32 %v2843_v22, %v3993_v1 }
 0x4c7   : > { %2349 = vmatmul.mubr.f32.gmra.mrb[10].mxu0 %v4079_v24  ;;  %v1035_v26 = vmul.f32 %v4004_v0, %v1013_v36 }
 0x4c8   : > { %v2845_v27 = vpop.eup %2844  ;;  %2351 = vmatprep.mubr.f32.mxu0 %v4083_v25  ;;  %v1036_v61 = vmul.f32 %v4004_v0, %v1014_v55 }
 0x4c9   : > { %v4091_v30 = vadd.f32 %v4007_v6, %v1035_v26  ;;  %v1015_v32 = vmul.f32 %v2845_v27, %v3996_v46  ;;  %v1523_v26 = vld [vmem:[#allocation3 + $0x20] sm:$0xff]  ;;  %v1524_v27 = vld [vmem:[#allocation3 + $0x28] sm:$0xff] }
 0x4ca   : > { %v4095_v44 = vadd.f32 %v4007_v6, %v1036_v61 }
 0x4cb   : > { %2352 = vmatmul.mubr.f32.gmra.mrb[12].mxu0 %v4091_v30  ;;  %v1037_v1 = vmul.f32 %v4004_v0, %v1015_v32 }
 0x4cc   : > { %2354 = vmatprep.mubr.f32.mxu0 %v4095_v44 }
 0x4cd   : > { %v4101_v33 = vadd.f32 %v4007_v6, %v1037_v1  ;;  %v2565_v1 = vpack.c.bf16 %v1524_v27, %v1523_v26 }
 0x4cf   : > { %2355 = vmatmul.mubr.f32.gmra.mrb[14].mxu0 %v4101_v33  ;;  %2566 = vmatprep.subr.bf16.mxu0 %v2565_v1 }
 0x4d0   : > { %2568 = vmatpush3.bf16.msra.mxu0 %v2565_v1 }
 0x586   : > { %v2335_v34 = vpop.f32.mrb[0].mxu0 }
 0x587   : > { %v1142_v37 = vpop.f32.mrb[1].mxu0 }
 0x588   : > { %2373 = vmatprep.mubr.f32.mxu1 %v1142_v37 }
 0x589   : > { %2374 = vmatmul.mubr.f32.vlgmr.msra.gmra.mrb[0].mxu1 %v2335_v34 }
 0x58a   : > { %v2338_v40 = vpop.f32.mrb[2].mxu0 }
 0x58b   : > { %v1152_v46 = vpop.f32.mrb[3].mxu0 }
 0x58c   : > { %2376 = vmatprep.mubr.f32.mxu1 %v1152_v46 }
 0x58d   : > { %2377 = vmatmul.mubr.f32.gmra.mrb[2].mxu1 %v2338_v40 }
 0x58e   : > { %v2341_v41 = vpop.f32.mrb[4].mxu0 }
 0x58f   : > { %v1162_v21 = vpop.f32.mrb[5].mxu0 }
 0x590   : > { %2379 = vmatprep.mubr.f32.mxu1 %v1162_v21 }
 0x591   : > { %2380 = vmatmul.mubr.f32.gmra.mrb[4].mxu1 %v2341_v41 }
 0x592   : > { %v2344_v0 = vpop.f32.mrb[6].mxu0 }
 0x593   : > { %v1172_v42 = vpop.f32.mrb[7].mxu0 }
 0x594   : > { %2382 = vmatprep.mubr.f32.mxu1 %v1172_v42  ;;  %v1526_v42 = vld [vmem:[#allocation3 + $0x38] sm:$0xff] }
 0x595   : > { %2383 = vmatmul.mubr.f32.gmra.mrb[6].mxu1 %v2344_v0  ;;  %v1525_v0 = vld [vmem:[#allocation3 + $0x30] sm:$0xff] }
 0x596   : > { %v2347_v6 = vpop.f32.mrb[8].mxu0 }
 0x597   : > { %v1182_v52 = vpop.f32.mrb[9].mxu0 }
 0x598   : > { %2385 = vmatprep.mubr.f32.mxu1 %v1182_v52 }
 0x599   : > { %2386 = vmatmul.mubr.f32.gmra.mrb[8].mxu1 %v2347_v6 }
 0x59a   : > { %v2350_v53 = vpop.f32.mrb[10].mxu0 }
 0x59b   : > { %v1192_v54 = vpop.f32.mrb[11].mxu0 }
 0x59c   : > { %2388 = vmatprep.mubr.f32.mxu1 %v1192_v54 }
 0x59d   : > { %2389 = vmatmul.mubr.f32.gmra.mrb[10].mxu1 %v2350_v53  ;;  %v2569_v53 = vpack.c.bf16 %v1526_v42, %v1525_v0 }
 0x59e   : > { %v2353_v43 = vpop.f32.mrb[12].mxu0 }
 0x59f   : > { %v1202_v7 = vpop.f32.mrb[13].mxu0  ;;  %2570 = vmatprep.subr.bf16.mxu0 %v2569_v53 }
 0x5a0   : > { %2391 = vmatprep.mubr.f32.mxu1 %v1202_v7  ;;  %2572 = vmatpush3.bf16.msra.mxu0 %v2569_v53 }
 0x5a1   : > { %2392 = vmatmul.mubr.f32.gmra.mrb[12].mxu1 %v2353_v43 }
 0x5a2   : > { %v2356_v57 = vpop.f32.mrb[14].mxu0 }
 0x5a3   : > { %v1212_v58 = vpop.f32.mrb[15].mxu0 }
 0x5a4   : > { %2394 = vmatprep.mubr.f32.mxu1 %v1212_v58 }
 0x5a5   : > { %2395 = vmatmul.mubr.f32.gmra.mrb[14].mxu1 %v2356_v57 }
 0x65c   : > { %v2375_v28 = vpop.f32.mrb[0].mxu1 }
 0x65d   : > { %v1295_v4 = vpop.f32.mrb[1].mxu1  ;;  %v1378_v5 = vsel %vm1374_vm1, %v2375_v28, -inf }
 0x65e   : > { %1379 = vmax.xlane.f32.xlu1 %v1378_v5  ;;  %v1375_v47 = vsel %vm1374_vm1, %v1295_v4, -inf }
 0x65f   : > { %1376 = vmax.xlane.f32.xlu0 %v1375_v47 }
 0x660   : > { %v4106_v29 = vpop.f32.mrb[2].mxu1 }
 0x661   : > { %v4108_v50 = vpop.f32.mrb[3].mxu1  ;;  %v1384_v38 = vsel %vm1374_vm1, %v4106_v29, -inf }
 0x662   : > { %1385 = vmax.xlane.f32.xlu1 %v1384_v38  ;;  %v1381_v9 = vsel %vm1374_vm1, %v4108_v50, -inf }
 0x663   : > { %1382 = vmax.xlane.f32.xlu0 %v1381_v9 }
 0x664   : > { %v4114_v10 = vpop.f32.mrb[4].mxu1 }
 0x665   : > { %v4116_v11 = vpop.f32.mrb[5].mxu1  ;;  %v1390_v48 = vsel %vm1374_vm1, %v4114_v10, -inf }
 0x666   : > { %1391 = vmax.xlane.f32.xlu1 %v1390_v48  ;;  %v1387_v20 = vsel %vm1374_vm1, %v4116_v11, -inf }
 0x667   : > { %1388 = vmax.xlane.f32.xlu0 %v1387_v20 }
 0x668   : > { %v4122_v12 = vpop.f32.mrb[6].mxu1 }
 0x669   : > { %v4124_v23 = vpop.f32.mrb[7].mxu1  ;;  %v1396_v35 = vsel %vm1374_vm1, %v4122_v12, -inf }
 0x66a   : > { %1397 = vmax.xlane.f32.xlu1 %v1396_v35  ;;  %v1393_v49 = vsel %vm1374_vm1, %v4124_v23, -inf }
 0x66b   : > { %1394 = vmax.xlane.f32.xlu0 %v1393_v49 }
 0x66c   : > { %v4130_v18 = vpop.f32.mrb[8].mxu1 }
 0x66d   : > { %v4132_v19 = vpop.f32.mrb[9].mxu1  ;;  %v1402_v22 = vsel %vm1374_vm1, %v4130_v18, -inf }
 0x66e   : > { %1403 = vmax.xlane.f32.xlu1 %v1402_v22  ;;  %v1399_v36 = vsel %vm1374_vm1, %v4132_v19, -inf }
 0x66f   : > { %1400 = vmax.xlane.f32.xlu0 %v1399_v36 }
 0x670   : > { %v4138_v55 = vpop.f32.mrb[10].mxu1 }
 0x671   : > { %v4140_v61 = vpop.f32.mrb[11].mxu1  ;;  %v1408_v32 = vsel %vm1374_vm1, %v4138_v55, -inf }
 0x672   : > { %1409 = vmax.xlane.f32.xlu1 %v1408_v32  ;;  %v1405_v34 = vsel %vm1374_vm1, %v4140_v61, -inf }
 0x673   : > { %1406 = vmax.xlane.f32.xlu0 %v1405_v34 }
 0x674   : > { %v4146_v37 = vpop.f32.mrb[12].mxu1 }
 0x675   : > { %v4148_v40 = vpop.f32.mrb[13].mxu1  ;;  %v1414_v46 = vsel %vm1374_vm1, %v4146_v37, -inf }
 0x676   : > { %1415 = vmax.xlane.f32.xlu1 %v1414_v46  ;;  %v1411_v41 = vsel %vm1374_vm1, %v4148_v40, -inf }
 0x677   : > { %1412 = vmax.xlane.f32.xlu0 %v1411_v41 }
 0x678   : > { %v4154_v21 = vpop.f32.mrb[14].mxu1 }
 0x679   : > { %v4156_v6 = vpop.f32.mrb[15].mxu1  ;;  %v1420_v52 = vsel %vm1374_vm1, %v4154_v21, -inf }
 0x67a   : > { %1421 = vmax.xlane.f32.xlu1 %v1420_v52  ;;  %v1417_v54 = vsel %vm1374_vm1, %v4156_v6, -inf }
 0x67b   : > { %1418 = vmax.xlane.f32.xlu0 %v1417_v54 }
 0x6eb   : > { %v1380_v43 = vpop.xlane.xlu1 %1379 }
 0x6ec   : > { %v1424_v7 = vsub.f32 %v2375_v28, %v1380_v43  ;;  %v1377_v57 = vpop.xlane.xlu0 %1376 }
 0x6ed   : > { %v1423_v58 = vsub.f32 %v1295_v4, %v1377_v57 }
 0x6ee   : > { %v1441_v59 = vmul.f32 1.442695, %v1424_v7 }
 0x6ef   : > { %v1439_v60 = vmul.f32 1.442695, %v1423_v58  ;;  %v1386_v62 = vpop.xlane.xlu1 %1385 }
 0x6f0   : > { %2846 = vpow2.f32 %v1441_v59  ;;  %v1426_v63 = vsub.f32 %v4106_v29, %v1386_v62  ;;  %v1383_v8 = vpop.xlane.xlu0 %1382 }
 0x6f1   : > { %2848 = vpow2.f32 %v1439_v60  ;;  %v1425_v13 = vsub.f32 %v4108_v50, %v1383_v8 }
 0x6f2   : > { %v1445_v5 = vmul.f32 1.442695, %v1426_v63 }
 0x6f3   : > { %v1443_v47 = vmul.f32 1.442695, %v1425_v13  ;;  %v1392_v38 = vpop.xlane.xlu1 %1391 }
 0x6f4   : > { %2850 = vpow2.f32 %v1445_v5  ;;  %v1428_v9 = vsub.f32 %v4114_v10, %v1392_v38  ;;  %v1389_v48 = vpop.xlane.xlu0 %1388 }
 0x6f5   : > { %2852 = vpow2.f32 %v1443_v47  ;;  %v1427_v28 = vsub.f32 %v4116_v11, %v1389_v48 }
 0x6f6   : > { %v1449_v4 = vmul.f32 1.442695, %v1428_v9 }
 0x6f7   : > { %v1447_v20 = vmul.f32 1.442695, %v1427_v28  ;;  %v1398_v35 = vpop.xlane.xlu1 %1397 }
 0x6f8   : > { %2854 = vpow2.f32 %v1449_v4  ;;  %v1430_v29 = vsub.f32 %v4122_v12, %v1398_v35  ;;  %v1395_v49 = vpop.xlane.xlu0 %1394 }
 0x6f9   : > { %2856 = vpow2.f32 %v1447_v20  ;;  %v1429_v50 = vsub.f32 %v4124_v23, %v1395_v49 }
 0x6fa   : > { %v2847_v22 = vpop.eup %2846  ;;  %v1453_v36 = vmul.f32 1.442695, %v1430_v29 }
 0x6fb   : > { %v2849_v26 = vpop.eup %2848  ;;  %v1451_v27 = vmul.f32 1.442695, %v1429_v50  ;;  %v1404_v32 = vpop.xlane.xlu1 %1403  ;;  %v1474_v10 = vsel %vm1374_vm1, %v2847_v22, 0.0 }
 0x6fc   : > { %2858 = vpow2.f32 %v1453_v36  ;;  %v1432_v11 = vsub.f32 %v4130_v18, %v1404_v32  ;;  %1475 = vadd.xlane.f32.xlu1 %v1474_v10  ;;  %2413 = vmatprep.mubr.msk.f32.mxu0 %vm1374_vm1, %v2849_v26  ;;  %v1401_v1 = vpop.xlane.xlu0 %1400  ;;  %v1471_v12 = vsel %vm1374_vm1, %v2849_v26, 0.0 }
 0x6fd   : > { %2860 = vpow2.f32 %v1451_v27  ;;  %v1431_v34 = vsub.f32 %v4132_v19, %v1401_v1  ;;  %2414 = vmatmul.mubr.msk.f32.vlgmr.msra.gmra.mrb[16].mxu0 %vm1374_vm1, %v2847_v22  ;;  %1472 = vadd.xlane.f32.xlu0 %v1471_v12 }
 0x6fe   : > { %v2851_v23 = vpop.eup %2850  ;;  %v1457_v46 = vmul.f32 1.442695, %v1432_v11 }
 0x6ff   : > { %v2853_v41 = vpop.eup %2852  ;;  %v1455_v0 = vmul.f32 1.442695, %v1431_v34  ;;  %v1410_v42 = vpop.xlane.xlu1 %1409  ;;  %v1480_v52 = vsel %vm1374_vm1, %v2851_v23, 0.0 }
 0x700   : > { %2862 = vpow2.f32 %v1457_v46  ;;  %v1434_v18 = vsub.f32 %v4138_v55, %v1410_v42  ;;  %1481 = vadd.xlane.f32.xlu1 %v1480_v52  ;;  %2416 = vmatprep.mubr.msk.f32.mxu0 %vm1374_vm1, %v2853_v41  ;;  %v1407_v53 = vpop.xlane.xlu0 %1406  ;;  %v1477_v54 = vsel %vm1374_vm1, %v2853_v41, 0.0  ;;  %v1753_v46 = vld [vmem:[#allocation18 + $0x8] sm:$0xff]  ;;  %v1754_v41 = vld [vmem:[#allocation18 + $0x10] sm:$0xff]  ;;  %v1755_v42 = vld [vmem:[#allocation18 + $0x18] sm:$0xff] }
 0x701   : > { %2864 = vpow2.f32 %v1455_v0  ;;  %v1433_v19 = vsub.f32 %v4140_v61, %v1407_v53  ;;  %2417 = vmatmul.mubr.msk.f32.gmra.mrb[18].mxu0 %vm1374_vm1, %v2851_v23  ;;  %1478 = vadd.xlane.f32.xlu0 %v1477_v54  ;;  %v1752_v23 = vld [vmem:[#allocation18] sm:$0xff]  ;;  %v2577_v52 = vpack.c.bf16 %v1755_v42, %v1754_v41  ;;  %v1757_v53 = vld [vmem:[#allocation18 + $0x28] sm:$0xff] }
 0x702   : > { %v2855_v43 = vpop.eup %2854  ;;  %v1461_v7 = vmul.f32 1.442695, %v1434_v18  ;;  %v2573_v0 = vpack.c.bf16 %v1753_v46, %v1752_v23  ;;  %v1756_v18 = vld [vmem:[#allocation18 + $0x20] sm:$0xff] }
 0x703   : > { %v2857_v57 = vpop.eup %2856  ;;  %v1459_v58 = vmul.f32 1.442695, %v1433_v19  ;;  %v1416_v59 = vpop.xlane.xlu1 %1415  ;;  %v1486_v60 = vsel %vm1374_vm1, %v2855_v43, 0.0  ;;  %v2581_v54 = vpack.c.bf16 %v1757_v53, %v1756_v18  ;;  %v1758_v19 = vld [vmem:[#allocation18 + $0x30] sm:$0xff] }
 0x704   : > { %2866 = vpow2.f32 %v1461_v7  ;;  %v1436_v55 = vsub.f32 %v4146_v37, %v1416_v59  ;;  %1487 = vadd.xlane.f32.xlu1 %v1486_v60  ;;  %2419 = vmatprep.mubr.msk.f32.mxu0 %vm1374_vm1, %v2857_v57  ;;  %v1413_v62 = vpop.xlane.xlu0 %1412  ;;  %v1483_v63 = vsel %vm1374_vm1, %v2857_v57, 0.0  ;;  %v1760_v57 = vld [vmem:[#allocation18 + $0x40] sm:$0xff]  ;;  %v1762_v60 = vld [vmem:[#allocation18 + $0x50] sm:$0xff] }
 0x705   : > { %2868 = vpow2.f32 %v1459_v58  ;;  %v1435_v61 = vsub.f32 %v4148_v40, %v1413_v62  ;;  %2420 = vmatmul.mubr.msk.f32.gmra.mrb[20].mxu0 %vm1374_vm1, %v2855_v43  ;;  %1484 = vadd.xlane.f32.xlu0 %v1483_v63  ;;  %v1759_v43 = vld [vmem:[#allocation18 + $0x38] sm:$0xff]  ;;  %v1761_v58 = vld [vmem:[#allocation18 + $0x48] sm:$0xff]  ;;  %v1764_v63 = vld [vmem:[#allocation18 + $0x60] sm:$0xff] }
 0x706   : > { %v2859_v8 = vpop.eup %2858  ;;  %v1465_v13 = vmul.f32 1.442695, %v1436_v55  ;;  %2574 = vmatprep.subr.bf16.mxu1 %v2573_v0  ;;  %v2585_v7 = vpack.c.bf16 %v1759_v43, %v1758_v19  ;;  %v2589_v59 = vpack.c.bf16 %v1761_v58, %v1760_v57  ;;  %v1763_v55 = vld [vmem:[#allocation18 + $0x58] sm:$0xff] }
 0x707   : > { %v2861_v5 = vpop.eup %2860  ;;  %v1463_v47 = vmul.f32 1.442695, %v1435_v61  ;;  %v1422_v38 = vpop.xlane.xlu1 %1421  ;;  %v1492_v9 = vsel %vm1374_vm1, %v2859_v8, 0.0  ;;  %2576 = vmatpush3.bf16.msra.mxu1 %v2573_v0  ;;  %v2593_v62 = vpack.c.bf16 %v1763_v55, %v1762_v60  ;;  %v1765_v61 = vld [vmem:[#allocation18 + $0x68] sm:$0xff] }
 0x708   : > { %2870 = vpow2.f32 %v1465_v13  ;;  %v1438_v37 = vsub.f32 %v4154_v21, %v1422_v38  ;;  %1493 = vadd.xlane.f32.xlu1 %v1492_v9  ;;  %2422 = vmatprep.mubr.msk.f32.mxu0 %vm1374_vm1, %v2861_v5  ;;  %v1419_v48 = vpop.xlane.xlu0 %1418  ;;  %v1489_v28 = vsel %vm1374_vm1, %v2861_v5, 0.0  ;;  %v1766_v13 = vld [vmem:[#allocation18 + $0x70] sm:$0xff]  ;;  %v1767_v5 = vld [vmem:[#allocation18 + $0x78] sm:$0xff] }
 0x709   : > { %2872 = vpow2.f32 %v1463_v47  ;;  %v1437_v40 = vsub.f32 %v4156_v6, %v1419_v48  ;;  %2423 = vmatmul.mubr.msk.f32.gmra.mrb[22].mxu0 %vm1374_vm1, %v2859_v8  ;;  %1490 = vadd.xlane.f32.xlu0 %v1489_v28  ;;  %v2597_v8 = vpack.c.bf16 %v1765_v61, %v1764_v63  ;;  %v2601_v47 = vpack.c.bf16 %v1767_v5, %v1766_v13 }
 0x70a   : > { %v2863_v4 = vpop.eup %2862  ;;  %v1469_v20 = vmul.f32 1.442695, %v1438_v37  ;;  %2578 = vmatprep.subr.bf16.mxu1 %v2577_v52 }
 0x70b   : > { %v2865_v35 = vpop.eup %2864  ;;  %v1467_v29 = vmul.f32 1.442695, %v1437_v40  ;;  %v1498_v49 = vsel %vm1374_vm1, %v2863_v4, 0.0  ;;  %2580 = vmatpush3.bf16.msra.mxu1 %v2577_v52 }
 0x70c   : > { %2874 = vpow2.f32 %v1469_v20  ;;  %1499 = vadd.xlane.f32.xlu1 %v1498_v49  ;;  %2425 = vmatprep.mubr.msk.f32.mxu0 %vm1374_vm1, %v2865_v35  ;;  %v1495_v21 = vsel %vm1374_vm1, %v2865_v35, 0.0 }
 0x70d   : > { %2876 = vpow2.f32 %v1467_v29  ;;  %2426 = vmatmul.mubr.msk.f32.gmra.mrb[24].mxu0 %vm1374_vm1, %v2863_v4  ;;  %1496 = vadd.xlane.f32.xlu0 %v1495_v21 }
 0x70e   : > { %v2867_v6 = vpop.eup %2866  ;;  %2582 = vmatprep.subr.bf16.mxu1 %v2581_v54 }
 0x70f   : > { %v2869_v50 = vpop.eup %2868  ;;  %v1504_v22 = vsel %vm1374_vm1, %v2867_v6, 0.0  ;;  %2584 = vmatpush3.bf16.msra.mxu1 %v2581_v54 }
 0x710   : > { %1505 = vadd.xlane.f32.xlu1 %v1504_v22  ;;  %2428 = vmatprep.mubr.msk.f32.mxu0 %vm1374_vm1, %v2869_v50  ;;  %v1501_v36 = vsel %vm1374_vm1, %v2869_v50, 0.0 }
 0x711   : > { %2429 = vmatmul.mubr.msk.f32.gmra.mrb[26].mxu0 %vm1374_vm1, %v2867_v6  ;;  %1502 = vadd.xlane.f32.xlu0 %v1501_v36 }
 0x712   : > { %v2871_v26 = vpop.eup %2870  ;;  %2586 = vmatprep.subr.bf16.mxu1 %v2585_v7 }
 0x713   : > { %v2873_v27 = vpop.eup %2872  ;;  %v1510_v32 = vsel %vm1374_vm1, %v2871_v26, 0.0  ;;  %2588 = vmatpush3.bf16.msra.mxu1 %v2585_v7 }
 0x714   : > { %1511 = vadd.xlane.f32.xlu1 %v1510_v32  ;;  %2431 = vmatprep.mubr.msk.f32.mxu0 %vm1374_vm1, %v2873_v27  ;;  %v1507_v10 = vsel %vm1374_vm1, %v2873_v27, 0.0 }
 0x715   : > { %2432 = vmatmul.mubr.msk.f32.gmra.mrb[28].mxu0 %vm1374_vm1, %v2871_v26  ;;  %1508 = vadd.xlane.f32.xlu0 %v1507_v10 }
 0x716   : > { %v2875_v11 = vpop.eup %2874  ;;  %2590 = vmatprep.subr.bf16.mxu1 %v2589_v59 }
 0x717   : > { %v2877_v1 = vpop.eup %2876  ;;  %v1516_v12 = vsel %vm1374_vm1, %v2875_v11, 0.0  ;;  %2592 = vmatpush3.bf16.msra.mxu1 %v2589_v59 }
 0x718   : > { %1517 = vadd.xlane.f32.xlu1 %v1516_v12  ;;  %2434 = vmatprep.mubr.msk.f32.mxu0 %vm1374_vm1, %v2877_v1  ;;  %v1513_v34 = vsel %vm1374_vm1, %v2877_v1, 0.0 }
 0x719   : > { %2435 = vmatmul.mubr.msk.f32.gmra.mrb[30].mxu0 %vm1374_vm1, %v2875_v11  ;;  %1514 = vadd.xlane.f32.xlu0 %v1513_v34 }
 0x71a   : > { %2594 = vmatprep.subr.bf16.mxu1 %v2593_v62 }
 0x71b   : > { %2596 = vmatpush3.bf16.msra.mxu1 %v2593_v62 }
 0x71c   : > { %2598 = vmatprep.subr.bf16.mxu1 %v2597_v8 }
 0x71f   : > { %2600 = vmatpush3.bf16.msra.mxu1 %v2597_v8 }
 0x720   : > { %2602 = vmatprep.subr.bf16.mxu1 %v2601_v47 }
 0x723   : > { %2604 = vmatpush3.bf16.msra.mxu1 %v2601_v47 }
 0x789   : > { %v1476_v9 = vpop.xlane.xlu1 %1475 }
 0x78a   : > { %v1473_v38 = vpop.xlane.xlu0 %1472 }
 0x78b   : > { %2878 = vrcp.f32 %v1473_v38 }
 0x78c   : > { %2880 = vrcp.f32 %v1476_v9 }
 0x78d   : > { %v1482_v48 = vpop.xlane.xlu1 %1481 }
 0x78e   : > { %v1479_v37 = vpop.xlane.xlu0 %1478 }
 0x78f   : > { %2882 = vrcp.f32 %v1479_v37 }
 0x790   : > { %2884 = vrcp.f32 %v1482_v48 }
 0x791   : > { %v1488_v40 = vpop.xlane.xlu1 %1487 }
 0x792   : > { %v1485_v28 = vpop.xlane.xlu0 %1484 }
 0x793   : > { %2886 = vrcp.f32 %v1485_v28 }
 0x794   : > { %2888 = vrcp.f32 %v1488_v40 }
 0x795   : > { %v1494_v20 = vpop.xlane.xlu1 %1493  ;;  %v2879_v21 = vpop.eup %2878 }
 0x796   : > { %v1491_v4 = vpop.xlane.xlu0 %1490  ;;  %v2881_v50 = vpop.eup %2880 }
 0x797   : > { %2890 = vrcp.f32 %v1491_v4 }
 0x798   : > { %2892 = vrcp.f32 %v1494_v20 }
 0x799   : > { %v1500_v29 = vpop.xlane.xlu1 %1499  ;;  %v2883_v32 = vpop.eup %2882 }
 0x79a   : > { %v1497_v35 = vpop.xlane.xlu0 %1496  ;;  %v2885_v1 = vpop.eup %2884 }
 0x79b   : > { %2894 = vrcp.f32 %v1497_v35 }
 0x79c   : > { %2896 = vrcp.f32 %v1500_v29 }
 0x79d   : > { %v1506_v10 = vpop.xlane.xlu1 %1505  ;;  %v2887_v46 = vpop.eup %2886 }
 0x79e   : > { %v1503_v26 = vpop.xlane.xlu0 %1502  ;;  %v2889_v0 = vpop.eup %2888 }
 0x79f   : > { %2898 = vrcp.f32 %v1503_v26 }
 0x7a0   : > { %2900 = vrcp.f32 %v1506_v10 }
 0x7a1   : > { %v1512_v18 = vpop.xlane.xlu1 %1511  ;;  %v2891_v19 = vpop.eup %2890 }
 0x7a2   : > { %v1509_v42 = vpop.xlane.xlu0 %1508  ;;  %v2893_v7 = vpop.eup %2892 }
 0x7a3   : > { %2902 = vrcp.f32 %v1509_v42 }
 0x7a4   : > { %2904 = vrcp.f32 %v1512_v18 }
 0x7a5   : > { %v2895_v55 = vpop.eup %2894  ;;  %v1518_v62 = vpop.xlane.xlu1 %1517 }
 0x7a6   : > { %v1515_v59 = vpop.xlane.xlu0 %1514  ;;  %v2897_v61 = vpop.eup %2896 }
 0x7a7   : > { %2906 = vrcp.f32 %v1515_v59 }
 0x7a8   : > { %2908 = vrcp.f32 %v1518_v62 }
 0x7a9   : > { %v2899_v47 = vpop.eup %2898 }
 0x7aa   : > { %v2901_v9 = vpop.eup %2900 }
 0x7ad   : > { %v2903_v40 = vpop.eup %2902 }
 0x7ae   : > { %v2905_v20 = vpop.eup %2904 }
 0x7d0   : > { %v2415_v49 = vpop.f32.mrb[16].mxu0 }
 0x7d1   : > { %v1641_v6 = vpop.f32.mrb[17].mxu0  ;;  %v1737_v36 = vmul.f32 %v2881_v50, %v2415_v49 }
 0x7d2   : > { %v1736_v22 = vmul.f32 %v2879_v21, %v1641_v6  ;;  %v2907_v21 = vpop.eup %2906 }
 0x7d3   : > { %v2909_v50 = vpop.eup %2908 }
 0x7d4   : > { %v2418_v27 = vpop.f32.mrb[18].mxu0  ;;  %2469 = vmatprep.mubr.f32.mxu1 %v1736_v22 }
 0x7d5   : > { %v1651_v11 = vpop.f32.mrb[19].mxu0  ;;  %2470 = vmatmul.mubr.f32.vlgmr.msra.gmra.mrb[16].mxu1 %v1737_v36  ;;  %v1739_v34 = vmul.f32 %v2885_v1, %v2418_v27 }
 0x7d6   : > { %v1738_v12 = vmul.f32 %v2883_v32, %v1651_v11 }
 0x7d8   : > { %v2421_v23 = vpop.f32.mrb[20].mxu0  ;;  %2472 = vmatprep.mubr.f32.mxu1 %v1738_v12 }
 0x7d9   : > { %v1661_v41 = vpop.f32.mrb[21].mxu0  ;;  %2473 = vmatmul.mubr.f32.gmra.mrb[18].mxu1 %v1739_v34  ;;  %v1741_v53 = vmul.f32 %v2889_v0, %v2421_v23 }
 0x7da   : > { %v1740_v52 = vmul.f32 %v2887_v46, %v1661_v41 }
 0x7dc   : > { %v2424_v54 = vpop.f32.mrb[22].mxu0  ;;  %2475 = vmatprep.mubr.f32.mxu1 %v1740_v52 }
 0x7dd   : > { %v1671_v43 = vpop.f32.mrb[23].mxu0  ;;  %2476 = vmatmul.mubr.f32.gmra.mrb[20].mxu1 %v1741_v53  ;;  %v1743_v58 = vmul.f32 %v2893_v7, %v2424_v54 }
 0x7de   : > { %v1742_v57 = vmul.f32 %v2891_v19, %v1671_v43 }
 0x7e0   : > { %v2427_v60 = vpop.f32.mrb[24].mxu0  ;;  %2478 = vmatprep.mubr.f32.mxu1 %v1742_v57 }
 0x7e1   : > { %v1681_v63 = vpop.f32.mrb[25].mxu0  ;;  %2479 = vmatmul.mubr.f32.gmra.mrb[22].mxu1 %v1743_v58  ;;  %v1745_v13 = vmul.f32 %v2897_v61, %v2427_v60 }
 0x7e2   : > { %v1744_v8 = vmul.f32 %v2895_v55, %v1681_v63 }
 0x7e4   : > { %v2430_v5 = vpop.f32.mrb[26].mxu0  ;;  %2481 = vmatprep.mubr.f32.mxu1 %v1744_v8 }
 0x7e5   : > { %v1691_v38 = vpop.f32.mrb[27].mxu0  ;;  %2482 = vmatmul.mubr.f32.gmra.mrb[24].mxu1 %v1745_v13  ;;  %v1747_v48 = vmul.f32 %v2901_v9, %v2430_v5 }
 0x7e6   : > { %v1746_v37 = vmul.f32 %v2899_v47, %v1691_v38 }
 0x7e8   : > { %v2433_v28 = vpop.f32.mrb[28].mxu0  ;;  %2484 = vmatprep.mubr.f32.mxu1 %v1746_v37 }
 0x7e9   : > { %v1701_v4 = vpop.f32.mrb[29].mxu0  ;;  %2485 = vmatmul.mubr.f32.gmra.mrb[26].mxu1 %v1747_v48  ;;  %v1749_v29 = vmul.f32 %v2905_v20, %v2433_v28 }
 0x7ea   : > { %v1748_v35 = vmul.f32 %v2903_v40, %v1701_v4 }
 0x7ec   : > { %v2436_v49 = vpop.f32.mrb[30].mxu0  ;;  %2487 = vmatprep.mubr.f32.mxu1 %v1748_v35 }
 0x7ed   : > { %v1711_v6 = vpop.f32.mrb[31].mxu0  ;;  %2488 = vmatmul.mubr.f32.gmra.mrb[28].mxu1 %v1749_v29  ;;  %v1751_v36 = vmul.f32 %v2909_v50, %v2436_v49 }
 0x7ee   : > { %v1750_v22 = vmul.f32 %v2907_v21, %v1711_v6 }
 0x7f0   : > { %2490 = vmatprep.mubr.f32.mxu1 %v1750_v22 }
 0x7f1   : > { %2491 = vmatmul.mubr.f32.gmra.mrb[30].mxu1 %v1751_v36 }
 0x8a8   : > { %v2471_v26 = vpop.f32.mrb[16].mxu1 }
 0x8a9   : > { %v1840_v27 = vadd.f32 %v2471_v26, %v4019_v2  ;;  %v1834_v32 = vpop.f32.mrb[17].mxu1 }
 0x8aa   : > { %v1835_v10 = vadd.f32 %v1834_v32, %v4011_v39 }
 0x8ab   : > { %1914 = vst [vmem:[%s3809_s25 + $0x8] sm:$0xff] %v1840_v27 }
 0x8ac   : > { %1913 = vst [vmem:[%s3809_s25] sm:$0xff] %v1835_v10  ;;  %v2474_v11 = vpop.f32.mrb[18].mxu1 }
 0x8ad   : > { %v1850_v1 = vadd.f32 %v2474_v11, %v4030_v51  ;;  %v1844_v12 = vpop.f32.mrb[19].mxu1 }
 0x8ae   : > { %v1845_v34 = vadd.f32 %v1844_v12, %v4023_v31 }
 0x8af   : > { %1916 = vst [vmem:[%s3809_s25 + $0x18] sm:$0xff] %v1850_v1 }
 0x8b0   : > { %1915 = vst [vmem:[%s3809_s25 + $0x10] sm:$0xff] %v1845_v34  ;;  %v2477_v23 = vpop.f32.mrb[20].mxu1 }
 0x8b1   : > { %v1860_v2 = vadd.f32 %v2477_v23, %v4043_v45  ;;  %v1854_v46 = vpop.f32.mrb[21].mxu1 }
 0x8b2   : > { %v1855_v39 = vadd.f32 %v1854_v46, %v4037_v56 }
 0x8b3   : > { %1918 = vst [vmem:[%s3809_s25 + $0x28] sm:$0xff] %v1860_v2 }
 0x8b4   : > { %1917 = vst [vmem:[%s3809_s25 + $0x20] sm:$0xff] %v1855_v39  ;;  %v2480_v41 = vpop.f32.mrb[22].mxu1 }
 0x8b5   : > { %v1870_v51 = vadd.f32 %v2480_v41, %v4055_v14  ;;  %v1864_v0 = vpop.f32.mrb[23].mxu1 }
 0x8b6   : > { %v1865_v31 = vadd.f32 %v1864_v0, %v4047_v3 }
 0x8b7   : > { %1920 = vst [vmem:[%s3809_s25 + $0x38] sm:$0xff] %v1870_v51 }
 0x8b8   : > { %1919 = vst [vmem:[%s3809_s25 + $0x30] sm:$0xff] %v1865_v31  ;;  %v2483_v42 = vpop.f32.mrb[24].mxu1 }
 0x8b9   : > { %v1880_v45 = vadd.f32 %v2483_v42, %v4067_v15  ;;  %v1874_v52 = vpop.f32.mrb[25].mxu1 }
 0x8ba   : > { %v1875_v56 = vadd.f32 %v1874_v52, %v4059_v16 }
 0x8bb   : > { %1922 = vst [vmem:[%s3809_s25 + $0x48] sm:$0xff] %v1880_v45 }
 0x8bc   : > { %1921 = vst [vmem:[%s3809_s25 + $0x40] sm:$0xff] %v1875_v56  ;;  %v2486_v18 = vpop.f32.mrb[26].mxu1 }
 0x8bd   : > { %v1890_v14 = vadd.f32 %v2486_v18, %v4079_v24  ;;  %v1884_v3 = vpop.f32.mrb[27].mxu1 }
 0x8be   : > { %v1885_v53 = vadd.f32 %v1884_v3, %v4071_v17 }
 0x8bf   : > { %1924 = vst [vmem:[%s3809_s25 + $0x58] sm:$0xff] %v1890_v14 }
 0x8c0   : > { %1923 = vst [vmem:[%s3809_s25 + $0x50] sm:$0xff] %v1885_v53  ;;  %v2489_v15 = vpop.f32.mrb[28].mxu1 }
 0x8c1   : > { %v1900_v16 = vadd.f32 %v2489_v15, %v4091_v30  ;;  %v1894_v54 = vpop.f32.mrb[29].mxu1 }
 0x8c2   : > { %v1895_v19 = vadd.f32 %v1894_v54, %v4083_v25 }
 0x8c3   : > { %1926 = vst [vmem:[%s3809_s25 + $0x68] sm:$0xff] %v1900_v16 }
 0x8c4   : > { %1925 = vst [vmem:[%s3809_s25 + $0x60] sm:$0xff] %v1895_v19  ;;  %v2492_v24 = vpop.f32.mrb[30].mxu1 }
 0x8c5   : > { %v1910_v17 = vadd.f32 %v2492_v24, %v4101_v33  ;;  %v1904_v43 = vpop.f32.mrb[31].mxu1 }
 0x8c6   : > { %v1905_v25 = vadd.f32 %v1904_v43, %v4095_v44 }
 0x8c7   : > { %1928 = vst [vmem:[%s3809_s25 + $0x78] sm:$0xff] %v1910_v17 }
 0x8c8   : > { %1927 = vst [vmem:[%s3809_s25 + $0x70] sm:$0xff] %v1905_v25 }
 0x8c9   : > { %3179 = shalt.err (!%p3176_p12)
}
 0x8ca   : > { %s3180_s25 = scalar_lea.hbm %s4243_s3, 2048  ;;  %s3184_s30 = scalar_lea.hbm %s4389_s21, 8192 }
 0x8cb   : > { %p3181_p2 = scmp.ne.s32.totalorder %s4243_s3, %s3180_s25  ;;  %p3185_p6 = scmp.lt.u32.totalorder %s4243_s3, %s4389_s21 }
 0x8cc   : > { %p3186_p3 = scmp.lt.u32.totalorder %s3184_s30, %s3180_s25  ;;  %p3188_p8 = scmp.lt.u32.totalorder %s3180_s25, %s4243_s3 }
 0x8cd   : > { %p3182_p1 = pnand %p3181_p2, %p4390_p13 }
 0x8ce   : > { %p3187_p11 = por %p3186_p3, %p3185_p6 }
 0x8cf   : > { %p3183_p10 = pneg %p3182_p1 }
 0x8d0   : > { %p3189_p0 = por %p3188_p8, %p3187_p11 }
 0x8d2   : > { %p3190_p9 = pnand %p3189_p0, %p3183_p10 }
 0x8d4   : > { %3193 = shalt.err (!%p3190_p9)
}
 0x8d5   : > { %s3325_s26 = smov 128   ;;  %s3326_s6 = smov 8  }
 0x8d6   : > { %2645 = dma.vmem_to_hbm [thread:$0]  (%p4390_p13), %s4245_s8, 2048, %s4243_s3, %s1930_s4, %s3325_s26, %s3325_s26, %s3326_s6  }
 0x8d7 PF: > { %p2695_p4 = scmp.ge.s32.totalorder %s3308_s19, 2  ;;  %s1960_s15 = sand.u32 1, %s3280_s12  }
 0x8d8   : > { %p4391_p5 = scmp.ne.s32.totalorder %s4363_s29, 0  ;;  %s1961_s20 = scalar_lea.sflag [#allocation6], %s1960_s15 }
 0x8da   : > { %p2677_p7 = pnand %p2695_p4, %p4391_p5 }
 0x8dc   : > { %3263 = dma.done.wait (!%p2677_p7), %s1961_s20, 2048  }
 0x8dd   : > { %3265 = vsyncadd (!%p2677_p7), %s1961_s20, 4294965248  ;;  %s31_s19 = sadd.s32 1, %s3308_s19   ;;  %s4392_s1 = sld [smem:[#allocation31_spill]] }
 0x8de   : > { %p28_p12 = scmp.ge.s32.totalorder %s31_s19, 6   ;;  %s4393_s30 = smov %s3272_s10 }
 0x8df   : > { %s4394_s10 = smov %s3276_s11  ;;  %s4395_s11 = smov %s3711_s7 }
 0x8e0   : > { %s4396_s12 = smov %s3284_s13  ;;  %s4397_s13 = smov %s3288_s14 }
 0x8e1   : > { %s4398_s14 = smov %s3658_s2  ;;  %s4399_s15 = smov %s3300_s17 }
 0x8e2   : > { %s4400_s16 = smov %s3304_s18  ;;  %s4401_s17 = smov %s4404_s24 }
 0x8e3   : > { %s4402_s18 = smov %s4392_s1  ;;  %30 = sbr.rel (!%p28_p12) target bundleno = 24 (0x18), region = 146 }
 0x8ea   :  { %1966 = vsyncpa [#allocation5], 1 }
 0x8eb   :  { %1968 = vsyncpa [#allocation5 + $0x1], 1 }
 0x8ec   :  { %1969 = vsyncpa [#allocation8], 1 }
 0x8ed   :  { %1971 = vsyncpa [#allocation8 + $0x1], 1 }
 0x8ee   :  { %1972 = vsyncpa [#allocation11], 1 }
 0x8ef   :  { %1973 = vsyncpa [#allocation14], 1 }
 0x8f0   :  { %1974 = vsyncpa [#allocation17], 1 }
 0x8f1   :  { %1975 = vsyncpa [#allocation6], 1 }
 0x8f2   :  { %1977 = vsyncpa [#allocation6 + $0x1], 1 }

</bundles_post_ra>
